<compile_context>
chip_gen: v6e
topology: v6e:2x2x1
jax: 0.10.0
libtpu: 0.0.40
codegen_flags: <defaults>
</compile_context>

<pallas_src>
import math
import functools

import numpy as np
import jax
import jax.numpy as jnp
from jax import lax
from jax.experimental import pallas as pl
from jax.experimental.pallas import tpu as pltpu

EPS = 1.1920928955078125e-07      # torch.finfo(float32).eps (nn.RMSNorm default eps)
NEG_INF = -1e30                   # finite "-inf" (avoids inf-inf NaNs in online softmax)


def _rmsnorm(v, w):               # v, w in f32
    ms = jnp.mean(v * v, axis=-1, keepdims=True)
    return v * lax.rsqrt(ms + EPS) * w


def _pick_tile(s, targets=(512, 256, 128, 64, 32, 16, 8)):
    for t in targets:
        if s % t == 0:
            return t
    return s                       # fall back to the full (unblocked) extent


def _vmem_cap_bytes():
    # Generation-aware cap (128 MiB on v5e/v6e, 64 MiB on v7x) with ~15% headroom for
    # Mosaic-internal scratch, instead of hard-coding the smallest generation everywhere.
    try:
        cap = int(getattr(pltpu.get_tpu_info(), "vmem_capacity_bytes", 128 << 20))
    except Exception:
        cap = 64 << 20             # conservative fallback (fits every generation)
    return max(16 << 20, int(cap * 0.85))


def _vmem_limit(est_bytes):
    return int(min(max(int(est_bytes) + (2 << 20), 16 << 20), _vmem_cap_bytes()))


# --------------------------------------------------------------------------------------
# Kernel 1: norms + down/up projections + RoPE, head-major outputs
# --------------------------------------------------------------------------------------
def _proj_kernel(x_ref, cos_ref, sin_ref,
                 n1_ref, kvd_w_ref, kvd_b_ref, qd_w_ref, qd_b_ref,
                 kvn_ref, qn_ref, kvu_w_ref, kvu_b_ref, qu_w_ref, qu_b_ref,
                 qn_out_ref, qr_out_ref, kn_out_ref, v_out_ref, kr_out_ref,
                 *, nhead, head_dim, rope_dim, kv_c, compute_dtype):
    f32 = jnp.float32
    cdt = compute_dtype
    half = rope_dim // 2
    d_k = nhead * head_dim

    x = x_ref[0].astype(f32)                                        # (Tm, D)
    h = _rmsnorm(x, n1_ref[...])                                    # f32 statistics
    hc = h.astype(cdt)                                              # MXU operand

    ckv = jnp.dot(hc, kvd_w_ref[...], preferred_element_type=f32) + kvd_b_ref[...]
    c_kv = ckv[:, :kv_c]
    k_rope_raw = ckv[:, kv_c:]                                      # (Tm, rope) [re | im]

    kv = jnp.dot(_rmsnorm(c_kv, kvn_ref[...]).astype(cdt), kvu_w_ref[...],
                 preferred_element_type=f32) + kvu_b_ref[...]       # (Tm, 2*H*hd) [k.. | v..]
    k_all = kv[:, :d_k]
    v_all = kv[:, d_k:]

    qd = jnp.dot(hc, qd_w_ref[...], preferred_element_type=f32) + qd_b_ref[...]
    qu = jnp.dot(_rmsnorm(qd, qn_ref[...]).astype(cdt), qu_w_ref[...],
                 preferred_element_type=f32) + qu_b_ref[...]        # (Tm, H*(hd+rope)) [nope..|rope..]
    q_nope_all = qu[:, :d_k]
    q_rope_all = qu[:, d_k:]

    c = cos_ref[...]                                                # (Tm, rope/2) f32
    s = sin_ref[...]

    def rope(t):                                                    # t: (Tm, rope) = [re | im]
        re, im = t[:, :half], t[:, half:]
        # TODO(synk): at production rope widths (>=128 lanes) rotate the whole head slab
        #             once with pltpu.roll so the pair swap rides the XLU.
        return jnp.concatenate([re * c - im * s, re * s + im * c], axis=-1)

    # TODO(synk): when head_dim % 128 == 0, emit lane-dense (B, S, H*hd) slabs instead of
    #             the per-head narrow stores below (one wide unmasked vst per tile).
    for hh in range(nhead):                                         # layout only (unrolled once)
        kn_out_ref[0, hh] = k_all[:, hh * head_dim:(hh + 1) * head_dim].astype(cdt)
        v_out_ref[0, hh] = v_all[:, hh * head_dim:(hh + 1) * head_dim].astype(cdt)
        qn_out_ref[0, hh] = q_nope_all[:, hh * head_dim:(hh + 1) * head_dim].astype(cdt)
        qr_out_ref[0, hh] = rope(q_rope_all[:, hh * rope_dim:(hh + 1) * rope_dim]).astype(cdt)
    kr_out_ref[0] = rope(k_rope_raw).astype(cdt)                    # shared across heads


# --------------------------------------------------------------------------------------
# Kernel 2: flash attention + fused o-projection over a flattened causal schedule
#           grid = (B, T) with T = lower-triangular (q_tile, head, kv_tile) steps
# --------------------------------------------------------------------------------------
def _flash_oproj_kernel(qtab_ref, htab_ref, ktab_ref, lastk_ref,
                        qn_ref, qr_ref, kn_ref, kr_ref, v_ref, ow_ref,
                        o_ref,
                        m_sc, l_sc, acc_sc, oacc_sc,
                        *, tq, tk, nhead, approx_recip):
    f32 = jnp.float32
    t = pl.program_id(1)
    qi = qtab_ref[t]
    h = htab_ref[t]
    ki = ktab_ref[t]
    last_kv = lastk_ref[t] == 1

    @pl.when(ki == 0)
    def _init():
        m_sc[...] = jnp.full_like(m_sc, NEG_INF)
        l_sc[...] = jnp.zeros_like(l_sc)
        acc_sc[...] = jnp.zeros_like(acc_sc)

    qn = qn_ref[0, 0]                                                # (tq, hd)
    qr = qr_ref[0, 0]                                                # (tq, rope)
    kn = kn_ref[0, 0]                                                # (tk, hd)
    kr = kr_ref[0]                                                   # (tk, rope) shared over heads
    v = v_ref[0, 0]                                                  # (tk, hd)

    # softmax scale already folded into the q_up weights host-side -> no per-tile scale mul
    s = (lax.dot_general(qn, kn, (((1,), (1,)), ((), ())), preferred_element_type=f32)
         + lax.dot_general(qr, kr, (((1,), (1,)), ((), ())), preferred_element_type=f32))

    def online_update(sv):
        m_prev = m_sc[...]
        m_new = jnp.maximum(m_prev, jnp.max(sv, axis=-1, keepdims=True))
        alpha = jnp.exp(m_prev - m_new)
        p = jnp.exp(sv - m_new)
        l_sc[...] = alpha * l_sc[...] + jnp.sum(p, axis=-1, keepdims=True)
        acc_sc[...] = alpha * acc_sc[...] + jnp.dot(p.astype(v.dtype), v,
                                                    preferred_element_type=f32)
        m_sc[...] = m_new

    # Only diagonal-straddling tiles build / apply the causal mask; the host-side schedule
    # already contains no fully-masked tiles, so interior tiles run the unmasked path.
    on_diag = ki * tk + (tk - 1) > qi * tq

    @pl.when(on_diag)
    def _masked():
        rows = qi * tq + lax.broadcasted_iota(jnp.int32, (tq, tk), 0)
        cols = ki * tk + lax.broadcasted_iota(jnp.int32, (tq, tk), 1)
        online_update(jnp.where(cols > rows, NEG_INF, s))

    @pl.when(jnp.logical_not(on_diag))
    def _unmasked():
        online_update(s)

    @pl.when(last_kv)
    def _head_finalize():
        inv_l = pl.reciprocal(l_sc[...], approx=approx_recip)        # exact on the f32 path
        attn_h = (acc_sc[...] * inv_l).astype(ow_ref.dtype)          # (tq, hd)
        contrib = jnp.dot(attn_h, ow_ref[...], preferred_element_type=f32)   # (tq, D)

        @pl.when(h == 0)
        def _set():
            oacc_sc[...] = contrib

        @pl.when(h > 0)
        def _acc():
            oacc_sc[...] = oacc_sc[...] + contrib

        @pl.when(h == nhead - 1)
        def _store():
            o_ref[0] = oacc_sc[...].astype(o_ref.dtype)              # lane-dense (Tq, D) slab


# --------------------------------------------------------------------------------------
# Kernel 3: residual 1 + norm2 + SwiGLU FFN, tiled over d_ff (streamed ff weights)
# --------------------------------------------------------------------------------------
def _out_ffn_kernel(x_ref, attn_ref, o_b_ref, n2_ref,
                    wu_ref, bu_ref, wg_ref, bg_ref, wo_ref, bo_ref,
                    out_ref, x1_sc, h2_sc, acc_sc, *, compute_dtype):
    f32 = jnp.float32
    f = pl.program_id(2)

    @pl.when(f == 0)
    def _first():
        x1 = x_ref[0].astype(f32) + attn_ref[0].astype(f32) + o_b_ref[...]   # residual 1 (+o bias)
        x1_sc[...] = x1
        h2_sc[...] = _rmsnorm(x1, n2_ref[...]).astype(compute_dtype)
        acc_sc[...] = jnp.zeros_like(acc_sc)

    h2 = h2_sc[...]
    u = jnp.dot(h2, wu_ref[...], preferred_element_type=f32) + bu_ref[...]
    g = jnp.dot(h2, wg_ref[...], preferred_element_type=f32) + bg_ref[...]
    ff_h = (u * (g * jax.nn.sigmoid(g))).astype(compute_dtype)               # u * silu(g)
    acc_sc[...] += jnp.dot(ff_h, wo_ref[...], preferred_element_type=f32)

    @pl.when(f == pl.num_programs(2) - 1)
    def _last():
        out_ref[0] = (x1_sc[...] + acc_sc[...] + bo_ref[...]).astype(out_ref.dtype)  # residual 2


# --------------------------------------------------------------------------------------
# Wrapper
# --------------------------------------------------------------------------------------
def llama_mla_block(x, params, cos, sin, *, nhead, head_dim, rope_dim,
                    kv_c, q_c, d_ff, compute_dtype=jnp.bfloat16):
    B, S, D = x.shape
    assert D == nhead * head_dim
    half = rope_dim // 2
    f32 = jnp.float32
    cdt = compute_dtype
    isz = jnp.dtype(cdt).itemsize
    x_isz = jnp.dtype(x.dtype).itemsize

    Tm = _pick_tile(S)
    Tq = _pick_tile(S, (512, 256, 128, 64, 32, 16, 8))   # bigger Tq cuts K/V re-streaming
    Tk = _pick_tile(S, (256, 128, 64, 32, 16, 8))
    Tf = _pick_tile(d_ff, (1024, 512, 256, 128))
    n_row, nq, n_ff = S // Tm, S // Tq, d_ff // Tf

    # ---- host-side weight column permutations (done once) -----------------------------
    #  kv_up : per-head [k|v]               -> [k(all heads) | v(all heads)]
    #  q_up  : per-head [nope|rope(interl)] -> [nope(all) | rope(all, de-interleaved)]
    #  kv_dn : [c_kv | k_rope(interleaved)] -> [c_kv | k_rope(de-interleaved)]
    def deint(base):
        return np.concatenate([base + 2 * np.arange(half), base + 1 + 2 * np.arange(half)])

    kv_perm = np.concatenate(
        [np.concatenate([h * 2 * head_dim + np.arange(head_dim) for h in range(nhead)]),
         np.concatenate([h * 2 * head_dim + head_dim + np.arange(head_dim) for h in range(nhead)])])
    wh = head_dim + rope_dim
    q_perm = np.concatenate(
        [np.concatenate([h * wh + np.arange(head_dim) for h in range(nhead)]),
         np.concatenate([deint(h * wh + head_dim) for h in range(nhead)])])
    kvd_perm = np.concatenate([np.arange(kv_c), deint(kv_c)])

    scale = 1.0 / math.sqrt(head_dim + rope_dim)         # folded into q_up weight/bias

    kvd_w = params['kv_down_w'][:, kvd_perm].astype(cdt)
    kvd_b = params['kv_down_b'][:, kvd_perm].astype(f32)
    qd_w = params['q_down_w'].astype(cdt)
    qd_b = params['q_down_b'].astype(f32)
    kvu_w = params['kv_up_w'][:, kv_perm].astype(cdt)
    kvu_b = params['kv_up_b'][:, kv_perm].astype(f32)
    qu_w = (params['q_up_w'][:, q_perm] * scale).astype(cdt)
    qu_b = (params['q_up_b'][:, q_perm] * scale).astype(f32)
    o_w = params['o_w'].astype(cdt)
    o_b = params['o_b'].astype(f32)
    wu = params['ff_in_w'][:, :d_ff].astype(cdt)          # SwiGLU weight split -> aligned halves
    bu = params['ff_in_b'][:, :d_ff].astype(f32)
    wg = params['ff_in_w'][:, d_ff:].astype(cdt)
    bg = params['ff_in_b'][:, d_ff:].astype(f32)
    wo = params['ff_out_w'].astype(cdt)
    bo = params['ff_out_b'].astype(f32)
    n1 = params['norm1_w'].astype(f32)
    n2 = params['norm2_w'].astype(f32)
    kvn = params['kv_norm_w'].astype(f32)
    qn_w = params['q_norm_w'].astype(f32)

    cosf = cos.astype(f32)                                # (S, rope/2)
    sinf = sin.astype(f32)

    # TODO(synk): mark these constant whole-array specs pipeline_mode=pl.Buffered(1) once
    #             single-buffered pallas_call inputs are supported (halves weight residency).
    def _const2(a):
        return pl.BlockSpec(a.shape, lambda b, i: (0, 0))

    def _const3(a):
        return pl.BlockSpec(a.shape, lambda b, i, f: (0, 0))

    # ---------------- kernel 1: projections + RoPE --------------------------------------
    # TODO(synk): at production d_model, stream kvu_w/qu_w per head-group (extra grid axis,
    #             latents cached in scratch) instead of keeping them VMEM-resident.
    proj_weights = [n1, kvd_w, kvd_b, qd_w, qd_b, kvn, qn_w, kvu_w, kvu_b, qu_w, qu_b]
    w_proj_bytes = sum(int(a.size) * a.dtype.itemsize for a in proj_weights)
    proj_out_blk = (nhead * Tm * (3 * head_dim + rope_dim) + Tm * rope_dim) * isz
    proj_interm = Tm * (4 * D + (kv_c + rope_dim) + 2 * D + q_c
                        + nhead * (head_dim + rope_dim) + 2 * rope_dim) * 4
    proj_blk = (2 * (Tm * D * x_isz + 2 * Tm * half * 4) + 2 * proj_out_blk
                + 2 * w_proj_bytes + proj_interm)
    proj_bytes = (B * S * D * x_isz + 2 * S * half * 4 + w_proj_bytes
                  + B * S * (nhead * (3 * head_dim + rope_dim) + rope_dim) * isz)
    proj_flops = 2 * B * S * (D * (kv_c + rope_dim) + D * q_c
                              + kv_c * 2 * nhead * head_dim + q_c * nhead * wh)

    q_nope, q_rope, k_nope, v_heads, k_rope = pl.pallas_call(
        functools.partial(_proj_kernel, nhead=nhead, head_dim=head_dim,
                          rope_dim=rope_dim, kv_c=kv_c, compute_dtype=cdt),
        out_shape=(jax.ShapeDtypeStruct((B, nhead, S, head_dim), cdt),   # q_nope (scaled)
                   jax.ShapeDtypeStruct((B, nhead, S, rope_dim), cdt),   # q_rope (rotated, scaled)
                   jax.ShapeDtypeStruct((B, nhead, S, head_dim), cdt),   # k_nope
                   jax.ShapeDtypeStruct((B, nhead, S, head_dim), cdt),   # v
                   jax.ShapeDtypeStruct((B, S, rope_dim), cdt)),         # k_rope (shared)
        grid=(B, n_row),
        in_specs=([pl.BlockSpec((1, Tm, D), lambda b, i: (b, i, 0)),
                   pl.BlockSpec((Tm, half), lambda b, i: (i, 0)),
                   pl.BlockSpec((Tm, half), lambda b, i: (i, 0))]
                  + [_const2(w) for w in proj_weights]),
        out_specs=(pl.BlockSpec((1, nhead, Tm, head_dim), lambda b, i: (b, 0, i, 0)),
                   pl.BlockSpec((1, nhead, Tm, rope_dim), lambda b, i: (b, 0, i, 0)),
                   pl.BlockSpec((1, nhead, Tm, head_dim), lambda b, i: (b, 0, i, 0)),
                   pl.BlockSpec((1, nhead, Tm, head_dim), lambda b, i: (b, 0, i, 0)),
                   pl.BlockSpec((1, Tm, rope_dim), lambda b, i: (b, i, 0))),
        compiler_params=pltpu.CompilerParams(
            dimension_semantics=("parallel", "parallel"),
            vmem_limit_bytes=_vmem_limit(proj_blk)),
        cost_estimate=pl.CostEstimate(flops=int(proj_flops), transcendentals=int(3 * B * S),
                                      bytes_accessed=int(proj_bytes)),
    )(x, cosf, sinf, *proj_weights)

    # ---------------- kernel 2: flash attention + fused o-projection --------------------
    # Flattened lower-triangular (q_tile, head, kv_tile) schedule: masked kv tiles are
    # never DMA'd nor visited.
    qtab_l, htab_l, ktab_l, lastk_l = [], [], [], []
    for qi in range(nq):
        kmax = (qi * Tq + Tq - 1) // Tk
        for h in range(nhead):
            for ki in range(kmax + 1):
                qtab_l.append(qi)
                htab_l.append(h)
                ktab_l.append(ki)
                lastk_l.append(1 if ki == kmax else 0)
    n_steps = len(qtab_l)
    qtab = jnp.asarray(np.asarray(qtab_l, np.int32))
    htab = jnp.asarray(np.asarray(htab_l, np.int32))
    ktab = jnp.asarray(np.asarray(ktab_l, np.int32))
    lastk = jnp.asarray(np.asarray(lastk_l, np.int32))
    n_pairs = n_steps // max(nhead, 1)

    attn_blk = (2 * (Tq * (head_dim + rope_dim) + Tk * (2 * head_dim + rope_dim)
                     + head_dim * D) * isz
                + 2 * Tq * D * isz
                + (Tq * (head_dim + 2 + D)) * 4
                + 3 * Tq * Tk * 4)
    attn_bytes = (B * nhead * n_pairs * Tk * (2 * head_dim + rope_dim) * isz
                  + B * nhead * nq * Tq * (head_dim + rope_dim) * isz
                  + B * S * D * isz + nhead * head_dim * D * isz)
    attn_flops = (2 * B * nhead * n_pairs * Tq * Tk * (2 * head_dim + rope_dim)
                  + 2 * B * S * D * D)

    attn_proj = pl.pallas_call(
        functools.partial(_flash_oproj_kernel, tq=Tq, tk=Tk, nhead=nhead,
                          approx_recip=bool(jnp.dtype(cdt) != jnp.dtype(jnp.float32))),
        out_shape=jax.ShapeDtypeStruct((B, S, D), cdt),               # o-projected attention
        grid_spec=pltpu.PrefetchScalarGridSpec(
            num_scalar_prefetch=4,
            grid=(B, n_steps),
            in_specs=[
                pl.BlockSpec((1, 1, Tq, head_dim),
                             lambda b, t, qt, ht, kt, lk: (b, ht[t], qt[t], 0)),
                pl.BlockSpec((1, 1, Tq, rope_dim),
                             lambda b, t, qt, ht, kt, lk: (b, ht[t], qt[t], 0)),
                pl.BlockSpec((1, 1, Tk, head_dim),
                             lambda b, t, qt, ht, kt, lk: (b, ht[t], kt[t], 0)),
                pl.BlockSpec((1, Tk, rope_dim),
                             lambda b, t, qt, ht, kt, lk: (b, kt[t], 0)),
                pl.BlockSpec((1, 1, Tk, head_dim),
                             lambda b, t, qt, ht, kt, lk: (b, ht[t], kt[t], 0)),
                pl.BlockSpec((head_dim, D),
                             lambda b, t, qt, ht, kt, lk: (ht[t], 0)),
            ],
            out_specs=pl.BlockSpec((1, Tq, D),
                                   lambda b, t, qt, ht, kt, lk: (b, qt[t], 0)),
            scratch_shapes=[pltpu.VMEM((Tq, 1), jnp.float32),          # running max
                            pltpu.VMEM((Tq, 1), jnp.float32),          # running denom
                            pltpu.VMEM((Tq, head_dim), jnp.float32),   # per-head accumulator
                            pltpu.VMEM((Tq, D), jnp.float32)]),        # o-proj accumulator
        compiler_params=pltpu.CompilerParams(
            dimension_semantics=("parallel", "arbitrary"),
            vmem_limit_bytes=_vmem_limit(attn_blk)),
        cost_estimate=pl.CostEstimate(flops=int(attn_flops),
                                      transcendentals=int(B * nhead * n_pairs * Tq * Tk),
                                      bytes_accessed=int(attn_bytes)),
    )(qtab, htab, ktab, lastk, q_nope, q_rope, k_nope, k_rope, v_heads, o_w)

    # ---------------- kernel 3: residual + SwiGLU FFN (d_ff-tiled) ----------------------
    ffn_blk = (2 * (2 * Tm * D * x_isz + 2 * D * Tf * isz + Tf * D * isz + 2 * Tf * 4 + 3 * D * 4)
               + Tm * D * (4 + 4 + isz)          # x1 / acc / h2 scratch
               + 3 * Tm * Tf * 4)                # u / g / ff_h intermediates
    ffn_bytes = (2 * B * S * D * x_isz + B * S * D * isz
                 + B * n_row * (2 * D * d_ff + d_ff * D) * isz + 3 * D * 4)
    ffn_flops = 2 * B * S * (2 * D * d_ff + d_ff * D)

    out = pl.pallas_call(
        functools.partial(_out_ffn_kernel, compute_dtype=cdt),
        out_shape=jax.ShapeDtypeStruct((B, S, D), x.dtype),
        grid=(B, n_row, n_ff),
        in_specs=[pl.BlockSpec((1, Tm, D), lambda b, i, f: (b, i, 0)),
                  pl.BlockSpec((1, Tm, D), lambda b, i, f: (b, i, 0)),
                  _const3(o_b), _const3(n2),
                  pl.BlockSpec((D, Tf), lambda b, i, f: (0, f)),
                  pl.BlockSpec((1, Tf), lambda b, i, f: (0, f)),
                  pl.BlockSpec((D, Tf), lambda b, i, f: (0, f)),
                  pl.BlockSpec((1, Tf), lambda b, i, f: (0, f)),
                  pl.BlockSpec((Tf, D), lambda b, i, f: (f, 0)),
                  _const3(bo)],
        out_specs=pl.BlockSpec((1, Tm, D), lambda b, i, f: (b, i, 0)),
        scratch_shapes=[pltpu.VMEM((Tm, D), jnp.float32),   # x1 (residual-1)
                        pltpu.VMEM((Tm, D), cdt),           # h2 (normed FFN input)
                        pltpu.VMEM((Tm, D), jnp.float32)],  # FFN output accumulator
        compiler_params=pltpu.CompilerParams(
            dimension_semantics=("parallel", "parallel", "arbitrary"),
            vmem_limit_bytes=_vmem_limit(ffn_blk)),
        cost_estimate=pl.CostEstimate(flops=int(ffn_flops), transcendentals=int(B * S * d_ff),
                                      bytes_accessed=int(ffn_bytes)),
    )(x, attn_proj, o_b, n2, wu, bu, wg, bg, wo, bo)
    return out


# --------------------------------------------------------------------------------------
# Parameters + plain-JAX reference
# --------------------------------------------------------------------------------------
def init_params(key, d_model, nhead, head_dim, rope_dim, kv_c, q_c, d_ff):
    ks = jax.random.split(key, 8)

    def lin(k, fan_in, fan_out):
        kw, kb = jax.random.split(k)
        w = jax.random.normal(kw, (fan_in, fan_out), jnp.float32) / math.sqrt(fan_in)
        b = jax.random.normal(kb, (1, fan_out), jnp.float32) * 0.01
        return w, b

    p = {}
    p['kv_down_w'], p['kv_down_b'] = lin(ks[0], d_model, kv_c + rope_dim)
    p['q_down_w'], p['q_down_b'] = lin(ks[1], d_model, q_c)
    p['kv_up_w'], p['kv_up_b'] = lin(ks[2], kv_c, nhead * head_dim * 2)
    p['q_up_w'], p['q_up_b'] = lin(ks[3], q_c, nhead * (head_dim + rope_dim))
    p['o_w'], p['o_b'] = lin(ks[4], d_model, d_model)
    p['ff_in_w'], p['ff_in_b'] = lin(ks[5], d_model, 2 * d_ff)
    p['ff_out_w'], p['ff_out_b'] = lin(ks[6], d_ff, d_model)
    p['norm1_w'] = jnp.ones((1, d_model), jnp.float32)
    p['norm2_w'] = jnp.ones((1, d_model), jnp.float32)
    p['kv_norm_w'] = jnp.ones((1, kv_c), jnp.float32)
    p['q_norm_w'] = jnp.ones((1, q_c), jnp.float32)
    return p


def reference(x, p, cos, sin, *, nhead, head_dim, rope_dim, kv_c, q_c, d_ff):
    """Plain-JAX mirror of the PyTorch forward (eval mode)."""
    B, S, D = x.shape

    def rms(v, w):
        return v * lax.rsqrt(jnp.mean(v * v, -1, keepdims=True) + EPS) * w

    def rope(t):  # t: (B, S, H, rope)
        t2 = t.reshape(*t.shape[:-1], rope_dim // 2, 2)
        t0, t1 = t2[..., 0], t2[..., 1]
        c = cos[None, :, None, :]
        s = sin[None, :, None, :]
        return jnp.stack([t0 * c - t1 * s, t0 * s + t1 * c], -1).reshape(t.shape)

    h = rms(x, p['norm1_w'])
    ckv = h @ p['kv_down_w'] + p['kv_down_b']
    c_kv, k_rope = ckv[..., :kv_c], ckv[..., kv_c:]
    kv = rms(c_kv, p['kv_norm_w']) @ p['kv_up_w'] + p['kv_up_b']
    kv = kv.reshape(B, S, nhead, 2 * head_dim).transpose(0, 2, 1, 3)
    k, v = kv[..., :head_dim], kv[..., head_dim:]
    q = rms(h @ p['q_down_w'] + p['q_down_b'], p['q_norm_w']) @ p['q_up_w'] + p['q_up_b']
    q = q.reshape(B, S, nhead, head_dim + rope_dim).transpose(0, 2, 1, 3)
    qc, q_rope = q[..., :head_dim], q[..., head_dim:]
    k_rope = jnp.tile(k_rope[:, :, None, :], (1, 1, nhead, 1))
    k_rope = rope(k_rope).transpose(0, 2, 1, 3)
    q_rope = rope(q_rope.transpose(0, 2, 1, 3)).transpose(0, 2, 1, 3)
    kf = jnp.concatenate([k, k_rope], -1)
    qf = jnp.concatenate([qc, q_rope], -1)
    a = jnp.einsum('bhqd,bhkd->bhqk', qf, kf) / math.sqrt(head_dim + rope_dim)
    causal = jnp.triu(jnp.ones((S, S), bool), k=1)
    a = jnp.where(causal[None, None], -jnp.inf, a)
    a = jax.nn.softmax(a, -1)
    attn = jnp.einsum('bhqk,bhkd->bhqd', a, v).transpose(0, 2, 1, 3).reshape(B, S, D)
    x1 = x + attn @ p['o_w'] + p['o_b']
    h2 = rms(x1, p['norm2_w'])
    uv = h2 @ p['ff_in_w'] + p['ff_in_b']
    u, g = uv[..., :d_ff], uv[..., d_ff:]
    return x1 + (u * (g * jax.nn.sigmoid(g))) @ p['ff_out_w'] + p['ff_out_b']


if __name__ == "__main__":
    B, S, D = 2, 8, 32
    nhead, head_dim = 4, 8            # head_dim = d_model // nhead
    kv_c, q_c, rope_dim, d_ff = 16, 16, 8, 64

    key = jax.random.PRNGKey(0)
    kx, kp = jax.random.split(key)
    x = jax.random.normal(kx, (B, S, D), jnp.float32)
    params = init_params(kp, D, nhead, head_dim, rope_dim, kv_c, q_c, d_ff)

    # freqs_cis (complex (S, rope/2)) represented as cos/sin
    inv_freq = 1.0 / (10000.0 ** (jnp.arange(0, rope_dim, 2, dtype=jnp.float32) / rope_dim))
    ang = jnp.arange(S, dtype=jnp.float32)[:, None] * inv_freq[None, :]
    cos, sin = jnp.cos(ang), jnp.sin(ang)

    ref = reference(x, params, cos, sin, nhead=nhead, head_dim=head_dim,
                    rope_dim=rope_dim, kv_c=kv_c, q_c=q_c, d_ff=d_ff)

    # f32 compute path: tight semantic check (exact reciprocal on this path)
    out_f32 = llama_mla_block(x, params, cos, sin, nhead=nhead, head_dim=head_dim,
                              rope_dim=rope_dim, kv_c=kv_c, q_c=q_c, d_ff=d_ff,
                              compute_dtype=jnp.float32)
    out_f32 = jax.block_until_ready(out_f32)
    assert out_f32.shape == (B, S, D)
    err32 = jnp.max(jnp.abs(out_f32 - ref))
    assert jnp.allclose(out_f32, ref, rtol=1e-2, atol=1e-2), f"f32 mismatch, max err {err32}"

    # bf16 MXU path (default, optimized): looser numerical tolerance
    out_bf16 = llama_mla_block(x, params, cos, sin, nhead=nhead, head_dim=head_dim,
                               rope_dim=rope_dim, kv_c=kv_c, q_c=q_c, d_ff=d_ff,
                               compute_dtype=jnp.bfloat16)
    out_bf16 = jax.block_until_ready(out_bf16)
    errbf = jnp.max(jnp.abs(out_bf16.astype(jnp.float32) - ref))
    assert jnp.allclose(out_bf16.astype(jnp.float32), ref, rtol=1e-1, atol=1e-1), \
        f"bf16 mismatch, max err {errbf}"

    print("KERNEL_OK")
</pallas_src>

<mosaic_0001>
module attributes {stable_mosaic.version = 11 : i64} {
  func.func @_proj_kernel(%arg0: i32, %arg1: i32, %arg2: memref<1x8x32xf32, #tpu.memory_space<vmem>>, %arg3: memref<8x4xf32, #tpu.memory_space<vmem>>, %arg4: memref<8x4xf32, #tpu.memory_space<vmem>>, %arg5: memref<1x32xf32, #tpu.memory_space<vmem>>, %arg6: memref<32x24xf32, #tpu.memory_space<vmem>>, %arg7: memref<1x24xf32, #tpu.memory_space<vmem>>, %arg8: memref<32x16xf32, #tpu.memory_space<vmem>>, %arg9: memref<1x16xf32, #tpu.memory_space<vmem>>, %arg10: memref<1x16xf32, #tpu.memory_space<vmem>>, %arg11: memref<1x16xf32, #tpu.memory_space<vmem>>, %arg12: memref<16x64xf32, #tpu.memory_space<vmem>>, %arg13: memref<1x64xf32, #tpu.memory_space<vmem>>, %arg14: memref<16x64xf32, #tpu.memory_space<vmem>>, %arg15: memref<1x64xf32, #tpu.memory_space<vmem>>, %arg16: memref<1x4x8x8xf32, #tpu.memory_space<vmem>>, %arg17: memref<1x4x8x8xf32, #tpu.memory_space<vmem>>, %arg18: memref<1x4x8x8xf32, #tpu.memory_space<vmem>>, %arg19: memref<1x4x8x8xf32, #tpu.memory_space<vmem>>, %arg20: memref<1x8x8xf32, #tpu.memory_space<vmem>>) attributes {dimension_semantics = [#tpu.dimension_semantics<parallel>, #tpu.dimension_semantics<parallel>], iteration_bounds = array<i64: 2, 1>, scalar_prefetch = 0 : i64, scratch_operands = 0 : i64, tpu.core_type = #tpu.core_type<tc>, window_params = [{transform_indices = @transform_0, window_bounds = array<i64: 1, 8, 32>}, {transform_indices = @transform_1, window_bounds = array<i64: 8, 4>}, {transform_indices = @transform_2, window_bounds = array<i64: 8, 4>}, {pipeline_mode = #tpu.pipeline_mode<synchronous>, transform_indices = @transform_3, window_bounds = array<i64: 1, 32>}, {pipeline_mode = #tpu.pipeline_mode<synchronous>, transform_indices = @transform_4, window_bounds = array<i64: 32, 24>}, {pipeline_mode = #tpu.pipeline_mode<synchronous>, transform_indices = @transform_5, window_bounds = array<i64: 1, 24>}, {pipeline_mode = #tpu.pipeline_mode<synchronous>, transform_indices = @transform_6, window_bounds = array<i64: 32, 16>}, {pipeline_mode = #tpu.pipeline_mode<synchronous>, transform_indices = @transform_7, window_bounds = array<i64: 1, 16>}, {pipeline_mode = #tpu.pipeline_mode<synchronous>, transform_indices = @transform_8, window_bounds = array<i64: 1, 16>}, {pipeline_mode = #tpu.pipeline_mode<synchronous>, transform_indices = @transform_9, window_bounds = array<i64: 1, 16>}, {pipeline_mode = #tpu.pipeline_mode<synchronous>, transform_indices = @transform_10, window_bounds = array<i64: 16, 64>}, {pipeline_mode = #tpu.pipeline_mode<synchronous>, transform_indices = @transform_11, window_bounds = array<i64: 1, 64>}, {pipeline_mode = #tpu.pipeline_mode<synchronous>, transform_indices = @transform_12, window_bounds = array<i64: 16, 64>}, {pipeline_mode = #tpu.pipeline_mode<synchronous>, transform_indices = @transform_13, window_bounds = array<i64: 1, 64>}, {transform_indices = @transform_14, window_bounds = array<i64: 1, 4, 8, 8>}, {transform_indices = @transform_15, window_bounds = array<i64: 1, 4, 8, 8>}, {transform_indices = @transform_16, window_bounds = array<i64: 1, 4, 8, 8>}, {transform_indices = @transform_17, window_bounds = array<i64: 1, 4, 8, 8>}, {transform_indices = @transform_18, window_bounds = array<i64: 1, 8, 8>}]} {
    %c0 = arith.constant 0 : index
    %c0_0 = arith.constant 0 : index
    %c0_1 = arith.constant 0 : index
    %0 = vector.load %arg2[%c0, %c0_0, %c0_1] : memref<1x8x32xf32, #tpu.memory_space<vmem>>, vector<1x8x32xf32>
    %1 = vector.shape_cast %0 : vector<1x8x32xf32> to vector<8x32xf32>
    %c0_2 = arith.constant 0 : index
    %c0_3 = arith.constant 0 : index
    %2 = vector.load %arg5[%c0_2, %c0_3] : memref<1x32xf32, #tpu.memory_space<vmem>>, vector<1x32xf32>
    %3 = arith.mulf %1, %1 : vector<8x32xf32>
    %cst = arith.constant dense<0.000000e+00> : vector<8xf32>
    %4 = vector.multi_reduction <add>, %3, %cst [1] : vector<8x32xf32> to vector<8xf32>
    %5 = vector.shape_cast %4 : vector<8xf32> to vector<8x1xf32>
    %cst_4 = arith.constant 3.200000e+01 : f32
    %6 = vector.broadcast %cst_4 : f32 to vector<8x1xf32>
    %7 = arith.divf %5, %6 : vector<8x1xf32>
    %cst_5 = arith.constant 1.1920929E-7 : f32
    %8 = vector.broadcast %cst_5 : f32 to vector<8x1xf32>
    %9 = arith.addf %7, %8 : vector<8x1xf32>
    %10 = math.rsqrt %9 : vector<8x1xf32>
    %11 = vector.broadcast %10 : vector<8x1xf32> to vector<8x32xf32>
    %12 = arith.mulf %1, %11 : vector<8x32xf32>
    %13 = vector.broadcast %2 : vector<1x32xf32> to vector<8x32xf32>
    %14 = arith.mulf %12, %13 : vector<8x32xf32>
    %c0_6 = arith.constant 0 : index
    %c0_7 = arith.constant 0 : index
    %15 = vector.load %arg6[%c0_6, %c0_7] : memref<32x24xf32, #tpu.memory_space<vmem>>, vector<32x24xf32>
    %cst_8 = arith.constant dense<0.000000e+00> : vector<8x24xf32>
    %16 = tpu.matmul %14, %15, %cst_8 {dimension_numbers = #tpu.dot_dimension_numbers<[1], [0], [0], [1], [0, 0, 1, 1], [], []>} : vector<8x32xf32>, vector<32x24xf32>, vector<8x24xf32> -> vector<8x24xf32>
    %c0_9 = arith.constant 0 : index
    %c0_10 = arith.constant 0 : index
    %17 = vector.load %arg7[%c0_9, %c0_10] : memref<1x24xf32, #tpu.memory_space<vmem>>, vector<1x24xf32>
    %18 = vector.broadcast %17 : vector<1x24xf32> to vector<8x24xf32>
    %19 = arith.addf %16, %18 : vector<8x24xf32>
    %20 = vector.extract_strided_slice %19 {offsets = [0, 0], sizes = [8, 16], strides = [1, 1]} : vector<8x24xf32> to vector<8x16xf32>
    %21 = vector.extract_strided_slice %19 {offsets = [0, 16], sizes = [8, 8], strides = [1, 1]} : vector<8x24xf32> to vector<8x8xf32>
    %c0_11 = arith.constant 0 : index
    %c0_12 = arith.constant 0 : index
    %22 = vector.load %arg10[%c0_11, %c0_12] : memref<1x16xf32, #tpu.memory_space<vmem>>, vector<1x16xf32>
    %23 = arith.mulf %20, %20 : vector<8x16xf32>
    %cst_13 = arith.constant dense<0.000000e+00> : vector<8xf32>
    %24 = vector.multi_reduction <add>, %23, %cst_13 [1] : vector<8x16xf32> to vector<8xf32>
    %25 = vector.shape_cast %24 : vector<8xf32> to vector<8x1xf32>
    %cst_14 = arith.constant 1.600000e+01 : f32
    %26 = vector.broadcast %cst_14 : f32 to vector<8x1xf32>
    %27 = arith.divf %25, %26 : vector<8x1xf32>
    %cst_15 = arith.constant 1.1920929E-7 : f32
    %28 = vector.broadcast %cst_15 : f32 to vector<8x1xf32>
    %29 = arith.addf %27, %28 : vector<8x1xf32>
    %30 = math.rsqrt %29 : vector<8x1xf32>
    %31 = vector.broadcast %30 : vector<8x1xf32> to vector<8x16xf32>
    %32 = arith.mulf %20, %31 : vector<8x16xf32>
    %33 = vector.broadcast %22 : vector<1x16xf32> to vector<8x16xf32>
    %34 = arith.mulf %32, %33 : vector<8x16xf32>
    %c0_16 = arith.constant 0 : index
    %c0_17 = arith.constant 0 : index
    %35 = vector.load %arg12[%c0_16, %c0_17] : memref<16x64xf32, #tpu.memory_space<vmem>>, vector<16x64xf32>
    %cst_18 = arith.constant dense<0.000000e+00> : vector<8x64xf32>
    %36 = tpu.matmul %34, %35, %cst_18 {dimension_numbers = #tpu.dot_dimension_numbers<[1], [0], [0], [1], [0, 0, 1, 1], [], []>} : vector<8x16xf32>, vector<16x64xf32>, vector<8x64xf32> -> vector<8x64xf32>
    %c0_19 = arith.constant 0 : index
    %c0_20 = arith.constant 0 : index
    %37 = vector.load %arg13[%c0_19, %c0_20] : memref<1x64xf32, #tpu.memory_space<vmem>>, vector<1x64xf32>
    %38 = vector.broadcast %37 : vector<1x64xf32> to vector<8x64xf32>
    %39 = arith.addf %36, %38 : vector<8x64xf32>
    %40 = vector.extract_strided_slice %39 {offsets = [0, 0], sizes = [8, 32], strides = [1, 1]} : vector<8x64xf32> to vector<8x32xf32>
    %41 = vector.extract_strided_slice %39 {offsets = [0, 32], sizes = [8, 32], strides = [1, 1]} : vector<8x64xf32> to vector<8x32xf32>
    %c0_21 = arith.constant 0 : index
    %c0_22 = arith.constant 0 : index
    %42 = vector.load %arg8[%c0_21, %c0_22] : memref<32x16xf32, #tpu.memory_space<vmem>>, vector<32x16xf32>
    %cst_23 = arith.constant dense<0.000000e+00> : vector<8x16xf32>
    %43 = tpu.matmul %14, %42, %cst_23 {dimension_numbers = #tpu.dot_dimension_numbers<[1], [0], [0], [1], [0, 0, 1, 1], [], []>} : vector<8x32xf32>, vector<32x16xf32>, vector<8x16xf32> -> vector<8x16xf32>
    %c0_24 = arith.constant 0 : index
    %c0_25 = arith.constant 0 : index
    %44 = vector.load %arg9[%c0_24, %c0_25] : memref<1x16xf32, #tpu.memory_space<vmem>>, vector<1x16xf32>
    %45 = vector.broadcast %44 : vector<1x16xf32> to vector<8x16xf32>
    %46 = arith.addf %43, %45 : vector<8x16xf32>
    %c0_26 = arith.constant 0 : index
    %c0_27 = arith.constant 0 : index
    %47 = vector.load %arg11[%c0_26, %c0_27] : memref<1x16xf32, #tpu.memory_space<vmem>>, vector<1x16xf32>
    %48 = arith.mulf %46, %46 : vector<8x16xf32>
    %cst_28 = arith.constant dense<0.000000e+00> : vector<8xf32>
    %49 = vector.multi_reduction <add>, %48, %cst_28 [1] : vector<8x16xf32> to vector<8xf32>
    %50 = vector.shape_cast %49 : vector<8xf32> to vector<8x1xf32>
    %cst_29 = arith.constant 1.600000e+01 : f32
    %51 = vector.broadcast %cst_29 : f32 to vector<8x1xf32>
    %52 = arith.divf %50, %51 : vector<8x1xf32>
    %cst_30 = arith.constant 1.1920929E-7 : f32
    %53 = vector.broadcast %cst_30 : f32 to vector<8x1xf32>
    %54 = arith.addf %52, %53 : vector<8x1xf32>
    %55 = math.rsqrt %54 : vector<8x1xf32>
    %56 = vector.broadcast %55 : vector<8x1xf32> to vector<8x16xf32>
    %57 = arith.mulf %46, %56 : vector<8x16xf32>
    %58 = vector.broadcast %47 : vector<1x16xf32> to vector<8x16xf32>
    %59 = arith.mulf %57, %58 : vector<8x16xf32>
    %c0_31 = arith.constant 0 : index
    %c0_32 = arith.constant 0 : index
    %60 = vector.load %arg14[%c0_31, %c0_32] : memref<16x64xf32, #tpu.memory_space<vmem>>, vector<16x64xf32>
    %cst_33 = arith.constant dense<0.000000e+00> : vector<8x64xf32>
    %61 = tpu.matmul %59, %60, %cst_33 {dimension_numbers = #tpu.dot_dimension_numbers<[1], [0], [0], [1], [0, 0, 1, 1], [], []>} : vector<8x16xf32>, vector<16x64xf32>, vector<8x64xf32> -> vector<8x64xf32>
    %c0_34 = arith.constant 0 : index
    %c0_35 = arith.constant 0 : index
    %62 = vector.load %arg15[%c0_34, %c0_35] : memref<1x64xf32, #tpu.memory_space<vmem>>, vector<1x64xf32>
    %63 = vector.broadcast %62 : vector<1x64xf32> to vector<8x64xf32>
    %64 = arith.addf %61, %63 : vector<8x64xf32>
    %65 = vector.extract_strided_slice %64 {offsets = [0, 0], sizes = [8, 32], strides = [1, 1]} : vector<8x64xf32> to vector<8x32xf32>
    %66 = vector.extract_strided_slice %64 {offsets = [0, 32], sizes = [8, 32], strides = [1, 1]} : vector<8x64xf32> to vector<8x32xf32>
    %c0_36 = arith.constant 0 : index
    %c0_37 = arith.constant 0 : index
    %67 = vector.load %arg3[%c0_36, %c0_37] : memref<8x4xf32, #tpu.memory_space<vmem>>, vector<8x4xf32>
    %c0_38 = arith.constant 0 : index
    %c0_39 = arith.constant 0 : index
    %68 = vector.load %arg4[%c0_38, %c0_39] : memref<8x4xf32, #tpu.memory_space<vmem>>, vector<8x4xf32>
    %69 = vector.extract_strided_slice %40 {offsets = [0, 0], sizes = [8, 8], strides = [1, 1]} : vector<8x32xf32> to vector<8x8xf32>
    %c0_40 = arith.constant 0 : index
    %c0_41 = arith.constant 0 : index
    %c0_42 = arith.constant 0 : index
    %c0_43 = arith.constant 0 : index
    %70 = vector.load %arg18[%c0_40, %c0_41, %c0_42, %c0_43] : memref<1x4x8x8xf32, #tpu.memory_space<vmem>>, vector<1x1x8x8xf32>
    %71 = vector.shape_cast %70 : vector<1x1x8x8xf32> to vector<8x8xf32>
    %72 = vector.shape_cast %69 : vector<8x8xf32> to vector<1x1x8x8xf32>
    tpu.vector_store %arg18[%c0_40, %c0_41, %c0_42, %c0_43], %72 {strides = array<i32>} : memref<1x4x8x8xf32, #tpu.memory_space<vmem>>, vector<1x1x8x8xf32>,
    %73 = vector.extract_strided_slice %41 {offsets = [0, 0], sizes = [8, 8], strides = [1, 1]} : vector<8x32xf32> to vector<8x8xf32>
    %c0_44 = arith.constant 0 : index
    %c0_45 = arith.constant 0 : index
    %c0_46 = arith.constant 0 : index
    %c0_47 = arith.constant 0 : index
    %74 = vector.load %arg19[%c0_44, %c0_45, %c0_46, %c0_47] : memref<1x4x8x8xf32, #tpu.memory_space<vmem>>, vector<1x1x8x8xf32>
    %75 = vector.shape_cast %74 : vector<1x1x8x8xf32> to vector<8x8xf32>
    %76 = vector.shape_cast %73 : vector<8x8xf32> to vector<1x1x8x8xf32>
    tpu.vector_store %arg19[%c0_44, %c0_45, %c0_46, %c0_47], %76 {strides = array<i32>} : memref<1x4x8x8xf32, #tpu.memory_space<vmem>>, vector<1x1x8x8xf32>,
    %77 = vector.extract_strided_slice %65 {offsets = [0, 0], sizes = [8, 8], strides = [1, 1]} : vector<8x32xf32> to vector<8x8xf32>
    %c0_48 = arith.constant 0 : index
    %c0_49 = arith.constant 0 : index
    %c0_50 = arith.constant 0 : index
    %c0_51 = arith.constant 0 : index
    %78 = vector.load %arg16[%c0_48, %c0_49, %c0_50, %c0_51] : memref<1x4x8x8xf32, #tpu.memory_space<vmem>>, vector<1x1x8x8xf32>
    %79 = vector.shape_cast %78 : vector<1x1x8x8xf32> to vector<8x8xf32>
    %80 = vector.shape_cast %77 : vector<8x8xf32> to vector<1x1x8x8xf32>
    tpu.vector_store %arg16[%c0_48, %c0_49, %c0_50, %c0_51], %80 {strides = array<i32>} : memref<1x4x8x8xf32, #tpu.memory_space<vmem>>, vector<1x1x8x8xf32>,
    %81 = vector.extract_strided_slice %66 {offsets = [0, 0], sizes = [8, 8], strides = [1, 1]} : vector<8x32xf32> to vector<8x8xf32>
    %82 = vector.extract_strided_slice %81 {offsets = [0, 0], sizes = [8, 4], strides = [1, 1]} : vector<8x8xf32> to vector<8x4xf32>
    %83 = vector.extract_strided_slice %81 {offsets = [0, 4], sizes = [8, 4], strides = [1, 1]} : vector<8x8xf32> to vector<8x4xf32>
    %84 = arith.mulf %82, %67 : vector<8x4xf32>
    %85 = arith.mulf %83, %68 : vector<8x4xf32>
    %86 = arith.subf %84, %85 : vector<8x4xf32>
    %87 = arith.mulf %82, %68 : vector<8x4xf32>
    %88 = arith.mulf %83, %67 : vector<8x4xf32>
    %89 = arith.addf %87, %88 : vector<8x4xf32>
    %90 = tpu.concatenate %86, %89 in 1 : vector<8x4xf32>, vector<8x4xf32> -> vector<8x8xf32>
    %c0_52 = arith.constant 0 : index
    %c0_53 = arith.constant 0 : index
    %c0_54 = arith.constant 0 : index
    %c0_55 = arith.constant 0 : index
    %91 = vector.load %arg17[%c0_52, %c0_53, %c0_54, %c0_55] : memref<1x4x8x8xf32, #tpu.memory_space<vmem>>, vector<1x1x8x8xf32>
    %92 = vector.shape_cast %91 : vector<1x1x8x8xf32> to vector<8x8xf32>
    %93 = vector.shape_cast %90 : vector<8x8xf32> to vector<1x1x8x8xf32>
    tpu.vector_store %arg17[%c0_52, %c0_53, %c0_54, %c0_55], %93 {strides = array<i32>} : memref<1x4x8x8xf32, #tpu.memory_space<vmem>>, vector<1x1x8x8xf32>,
    %94 = vector.extract_strided_slice %40 {offsets = [0, 8], sizes = [8, 8], strides = [1, 1]} : vector<8x32xf32> to vector<8x8xf32>
    %c0_56 = arith.constant 0 : index
    %c1 = arith.constant 1 : index
    %c0_57 = arith.constant 0 : index
    %c0_58 = arith.constant 0 : index
    %95 = vector.load %arg18[%c0_56, %c1, %c0_57, %c0_58] : memref<1x4x8x8xf32, #tpu.memory_space<vmem>>, vector<1x1x8x8xf32>
    %96 = vector.shape_cast %95 : vector<1x1x8x8xf32> to vector<8x8xf32>
    %97 = vector.shape_cast %94 : vector<8x8xf32> to vector<1x1x8x8xf32>
    tpu.vector_store %arg18[%c0_56, %c1, %c0_57, %c0_58], %97 {strides = array<i32>} : memref<1x4x8x8xf32, #tpu.memory_space<vmem>>, vector<1x1x8x8xf32>,
    %98 = vector.extract_strided_slice %41 {offsets = [0, 8], sizes = [8, 8], strides = [1, 1]} : vector<8x32xf32> to vector<8x8xf32>
    %c0_59 = arith.constant 0 : index
    %c1_60 = arith.constant 1 : index
    %c0_61 = arith.constant 0 : index
    %c0_62 = arith.constant 0 : index
    %99 = vector.load %arg19[%c0_59, %c1_60, %c0_61, %c0_62] : memref<1x4x8x8xf32, #tpu.memory_space<vmem>>, vector<1x1x8x8xf32>
    %100 = vector.shape_cast %99 : vector<1x1x8x8xf32> to vector<8x8xf32>
    %101 = vector.shape_cast %98 : vector<8x8xf32> to vector<1x1x8x8xf32>
    tpu.vector_store %arg19[%c0_59, %c1_60, %c0_61, %c0_62], %101 {strides = array<i32>} : memref<1x4x8x8xf32, #tpu.memory_space<vmem>>, vector<1x1x8x8xf32>,
    %102 = vector.extract_strided_slice %65 {offsets = [0, 8], sizes = [8, 8], strides = [1, 1]} : vector<8x32xf32> to vector<8x8xf32>
    %c0_63 = arith.constant 0 : index
    %c1_64 = arith.constant 1 : index
    %c0_65 = arith.constant 0 : index
    %c0_66 = arith.constant 0 : index
    %103 = vector.load %arg16[%c0_63, %c1_64, %c0_65, %c0_66] : memref<1x4x8x8xf32, #tpu.memory_space<vmem>>, vector<1x1x8x8xf32>
    %104 = vector.shape_cast %103 : vector<1x1x8x8xf32> to vector<8x8xf32>
    %105 = vector.shape_cast %102 : vector<8x8xf32> to vector<1x1x8x8xf32>
    tpu.vector_store %arg16[%c0_63, %c1_64, %c0_65, %c0_66], %105 {strides = array<i32>} : memref<1x4x8x8xf32, #tpu.memory_space<vmem>>, vector<1x1x8x8xf32>,
    %106 = vector.extract_strided_slice %66 {offsets = [0, 8], sizes = [8, 8], strides = [1, 1]} : vector<8x32xf32> to vector<8x8xf32>
    %107 = vector.extract_strided_slice %106 {offsets = [0, 0], sizes = [8, 4], strides = [1, 1]} : vector<8x8xf32> to vector<8x4xf32>
    %108 = vector.extract_strided_slice %106 {offsets = [0, 4], sizes = [8, 4], strides = [1, 1]} : vector<8x8xf32> to vector<8x4xf32>
    %109 = arith.mulf %107, %67 : vector<8x4xf32>
    %110 = arith.mulf %108, %68 : vector<8x4xf32>
    %111 = arith.subf %109, %110 : vector<8x4xf32>
    %112 = arith.mulf %107, %68 : vector<8x4xf32>
    %113 = arith.mulf %108, %67 : vector<8x4xf32>
    %114 = arith.addf %112, %113 : vector<8x4xf32>
    %115 = tpu.concatenate %111, %114 in 1 : vector<8x4xf32>, vector<8x4xf32> -> vector<8x8xf32>
    %c0_67 = arith.constant 0 : index
    %c1_68 = arith.constant 1 : index
    %c0_69 = arith.constant 0 : index
    %c0_70 = arith.constant 0 : index
    %116 = vector.load %arg17[%c0_67, %c1_68, %c0_69, %c0_70] : memref<1x4x8x8xf32, #tpu.memory_space<vmem>>, vector<1x1x8x8xf32>
    %117 = vector.shape_cast %116 : vector<1x1x8x8xf32> to vector<8x8xf32>
    %118 = vector.shape_cast %115 : vector<8x8xf32> to vector<1x1x8x8xf32>
    tpu.vector_store %arg17[%c0_67, %c1_68, %c0_69, %c0_70], %118 {strides = array<i32>} : memref<1x4x8x8xf32, #tpu.memory_space<vmem>>, vector<1x1x8x8xf32>,
    %119 = vector.extract_strided_slice %40 {offsets = [0, 16], sizes = [8, 8], strides = [1, 1]} : vector<8x32xf32> to vector<8x8xf32>
    %c0_71 = arith.constant 0 : index
    %c2 = arith.constant 2 : index
    %c0_72 = arith.constant 0 : index
    %c0_73 = arith.constant 0 : index
    %120 = vector.load %arg18[%c0_71, %c2, %c0_72, %c0_73] : memref<1x4x8x8xf32, #tpu.memory_space<vmem>>, vector<1x1x8x8xf32>
    %121 = vector.shape_cast %120 : vector<1x1x8x8xf32> to vector<8x8xf32>
    %122 = vector.shape_cast %119 : vector<8x8xf32> to vector<1x1x8x8xf32>
    tpu.vector_store %arg18[%c0_71, %c2, %c0_72, %c0_73], %122 {strides = array<i32>} : memref<1x4x8x8xf32, #tpu.memory_space<vmem>>, vector<1x1x8x8xf32>,
    %123 = vector.extract_strided_slice %41 {offsets = [0, 16], sizes = [8, 8], strides = [1, 1]} : vector<8x32xf32> to vector<8x8xf32>
    %c0_74 = arith.constant 0 : index
    %c2_75 = arith.constant 2 : index
    %c0_76 = arith.constant 0 : index
    %c0_77 = arith.constant 0 : index
    %124 = vector.load %arg19[%c0_74, %c2_75, %c0_76, %c0_77] : memref<1x4x8x8xf32, #tpu.memory_space<vmem>>, vector<1x1x8x8xf32>
    %125 = vector.shape_cast %124 : vector<1x1x8x8xf32> to vector<8x8xf32>
    %126 = vector.shape_cast %123 : vector<8x8xf32> to vector<1x1x8x8xf32>
    tpu.vector_store %arg19[%c0_74, %c2_75, %c0_76, %c0_77], %126 {strides = array<i32>} : memref<1x4x8x8xf32, #tpu.memory_space<vmem>>, vector<1x1x8x8xf32>,
    %127 = vector.extract_strided_slice %65 {offsets = [0, 16], sizes = [8, 8], strides = [1, 1]} : vector<8x32xf32> to vector<8x8xf32>
    %c0_78 = arith.constant 0 : index
    %c2_79 = arith.constant 2 : index
    %c0_80 = arith.constant 0 : index
    %c0_81 = arith.constant 0 : index
    %128 = vector.load %arg16[%c0_78, %c2_79, %c0_80, %c0_81] : memref<1x4x8x8xf32, #tpu.memory_space<vmem>>, vector<1x1x8x8xf32>
    %129 = vector.shape_cast %128 : vector<1x1x8x8xf32> to vector<8x8xf32>
    %130 = vector.shape_cast %127 : vector<8x8xf32> to vector<1x1x8x8xf32>
    tpu.vector_store %arg16[%c0_78, %c2_79, %c0_80, %c0_81], %130 {strides = array<i32>} : memref<1x4x8x8xf32, #tpu.memory_space<vmem>>, vector<1x1x8x8xf32>,
    %131 = vector.extract_strided_slice %66 {offsets = [0, 16], sizes = [8, 8], strides = [1, 1]} : vector<8x32xf32> to vector<8x8xf32>
    %132 = vector.extract_strided_slice %131 {offsets = [0, 0], sizes = [8, 4], strides = [1, 1]} : vector<8x8xf32> to vector<8x4xf32>
    %133 = vector.extract_strided_slice %131 {offsets = [0, 4], sizes = [8, 4], strides = [1, 1]} : vector<8x8xf32> to vector<8x4xf32>
    %134 = arith.mulf %132, %67 : vector<8x4xf32>
    %135 = arith.mulf %133, %68 : vector<8x4xf32>
    %136 = arith.subf %134, %135 : vector<8x4xf32>
    %137 = arith.mulf %132, %68 : vector<8x4xf32>
    %138 = arith.mulf %133, %67 : vector<8x4xf32>
    %139 = arith.addf %137, %138 : vector<8x4xf32>
    %140 = tpu.concatenate %136, %139 in 1 : vector<8x4xf32>, vector<8x4xf32> -> vector<8x8xf32>
    %c0_82 = arith.constant 0 : index
    %c2_83 = arith.constant 2 : index
    %c0_84 = arith.constant 0 : index
    %c0_85 = arith.constant 0 : index
    %141 = vector.load %arg17[%c0_82, %c2_83, %c0_84, %c0_85] : memref<1x4x8x8xf32, #tpu.memory_space<vmem>>, vector<1x1x8x8xf32>
    %142 = vector.shape_cast %141 : vector<1x1x8x8xf32> to vector<8x8xf32>
    %143 = vector.shape_cast %140 : vector<8x8xf32> to vector<1x1x8x8xf32>
    tpu.vector_store %arg17[%c0_82, %c2_83, %c0_84, %c0_85], %143 {strides = array<i32>} : memref<1x4x8x8xf32, #tpu.memory_space<vmem>>, vector<1x1x8x8xf32>,
    %144 = vector.extract_strided_slice %40 {offsets = [0, 24], sizes = [8, 8], strides = [1, 1]} : vector<8x32xf32> to vector<8x8xf32>
    %c0_86 = arith.constant 0 : index
    %c3 = arith.constant 3 : index
    %c0_87 = arith.constant 0 : index
    %c0_88 = arith.constant 0 : index
    %145 = vector.load %arg18[%c0_86, %c3, %c0_87, %c0_88] : memref<1x4x8x8xf32, #tpu.memory_space<vmem>>, vector<1x1x8x8xf32>
    %146 = vector.shape_cast %145 : vector<1x1x8x8xf32> to vector<8x8xf32>
    %147 = vector.shape_cast %144 : vector<8x8xf32> to vector<1x1x8x8xf32>
    tpu.vector_store %arg18[%c0_86, %c3, %c0_87, %c0_88], %147 {strides = array<i32>} : memref<1x4x8x8xf32, #tpu.memory_space<vmem>>, vector<1x1x8x8xf32>,
    %148 = vector.extract_strided_slice %41 {offsets = [0, 24], sizes = [8, 8], strides = [1, 1]} : vector<8x32xf32> to vector<8x8xf32>
    %c0_89 = arith.constant 0 : index
    %c3_90 = arith.constant 3 : index
    %c0_91 = arith.constant 0 : index
    %c0_92 = arith.constant 0 : index
    %149 = vector.load %arg19[%c0_89, %c3_90, %c0_91, %c0_92] : memref<1x4x8x8xf32, #tpu.memory_space<vmem>>, vector<1x1x8x8xf32>
    %150 = vector.shape_cast %149 : vector<1x1x8x8xf32> to vector<8x8xf32>
    %151 = vector.shape_cast %148 : vector<8x8xf32> to vector<1x1x8x8xf32>
    tpu.vector_store %arg19[%c0_89, %c3_90, %c0_91, %c0_92], %151 {strides = array<i32>} : memref<1x4x8x8xf32, #tpu.memory_space<vmem>>, vector<1x1x8x8xf32>,
    %152 = vector.extract_strided_slice %65 {offsets = [0, 24], sizes = [8, 8], strides = [1, 1]} : vector<8x32xf32> to vector<8x8xf32>
    %c0_93 = arith.constant 0 : index
    %c3_94 = arith.constant 3 : index
    %c0_95 = arith.constant 0 : index
    %c0_96 = arith.constant 0 : index
    %153 = vector.load %arg16[%c0_93, %c3_94, %c0_95, %c0_96] : memref<1x4x8x8xf32, #tpu.memory_space<vmem>>, vector<1x1x8x8xf32>
    %154 = vector.shape_cast %153 : vector<1x1x8x8xf32> to vector<8x8xf32>
    %155 = vector.shape_cast %152 : vector<8x8xf32> to vector<1x1x8x8xf32>
    tpu.vector_store %arg16[%c0_93, %c3_94, %c0_95, %c0_96], %155 {strides = array<i32>} : memref<1x4x8x8xf32, #tpu.memory_space<vmem>>, vector<1x1x8x8xf32>,
    %156 = vector.extract_strided_slice %66 {offsets = [0, 24], sizes = [8, 8], strides = [1, 1]} : vector<8x32xf32> to vector<8x8xf32>
    %157 = vector.extract_strided_slice %156 {offsets = [0, 0], sizes = [8, 4], strides = [1, 1]} : vector<8x8xf32> to vector<8x4xf32>
    %158 = vector.extract_strided_slice %156 {offsets = [0, 4], sizes = [8, 4], strides = [1, 1]} : vector<8x8xf32> to vector<8x4xf32>
    %159 = arith.mulf %157, %67 : vector<8x4xf32>
    %160 = arith.mulf %158, %68 : vector<8x4xf32>
    %161 = arith.subf %159, %160 : vector<8x4xf32>
    %162 = arith.mulf %157, %68 : vector<8x4xf32>
    %163 = arith.mulf %158, %67 : vector<8x4xf32>
    %164 = arith.addf %162, %163 : vector<8x4xf32>
    %165 = tpu.concatenate %161, %164 in 1 : vector<8x4xf32>, vector<8x4xf32> -> vector<8x8xf32>
    %c0_97 = arith.constant 0 : index
    %c3_98 = arith.constant 3 : index
    %c0_99 = arith.constant 0 : index
    %c0_100 = arith.constant 0 : index
    %166 = vector.load %arg17[%c0_97, %c3_98, %c0_99, %c0_100] : memref<1x4x8x8xf32, #tpu.memory_space<vmem>>, vector<1x1x8x8xf32>
    %167 = vector.shape_cast %166 : vector<1x1x8x8xf32> to vector<8x8xf32>
    %168 = vector.shape_cast %165 : vector<8x8xf32> to vector<1x1x8x8xf32>
    tpu.vector_store %arg17[%c0_97, %c3_98, %c0_99, %c0_100], %168 {strides = array<i32>} : memref<1x4x8x8xf32, #tpu.memory_space<vmem>>, vector<1x1x8x8xf32>,
    %169 = vector.extract_strided_slice %21 {offsets = [0, 0], sizes = [8, 4], strides = [1, 1]} : vector<8x8xf32> to vector<8x4xf32>
    %170 = vector.extract_strided_slice %21 {offsets = [0, 4], sizes = [8, 4], strides = [1, 1]} : vector<8x8xf32> to vector<8x4xf32>
    %171 = arith.mulf %169, %67 : vector<8x4xf32>
    %172 = arith.mulf %170, %68 : vector<8x4xf32>
    %173 = arith.subf %171, %172 : vector<8x4xf32>
    %174 = arith.mulf %169, %68 : vector<8x4xf32>
    %175 = arith.mulf %170, %67 : vector<8x4xf32>
    %176 = arith.addf %174, %175 : vector<8x4xf32>
    %177 = tpu.concatenate %173, %176 in 1 : vector<8x4xf32>, vector<8x4xf32> -> vector<8x8xf32>
    %c0_101 = arith.constant 0 : index
    %c0_102 = arith.constant 0 : index
    %c0_103 = arith.constant 0 : index
    %178 = vector.load %arg20[%c0_101, %c0_102, %c0_103] : memref<1x8x8xf32, #tpu.memory_space<vmem>>, vector<1x8x8xf32>
    %179 = vector.shape_cast %178 : vector<1x8x8xf32> to vector<8x8xf32>
    %180 = vector.shape_cast %177 : vector<8x8xf32> to vector<1x8x8xf32>
    tpu.vector_store %arg20[%c0_101, %c0_102, %c0_103], %180 {strides = array<i32>} : memref<1x8x8xf32, #tpu.memory_space<vmem>>, vector<1x8x8xf32>,
    return
  }
  func.func @transform_0(%arg0: i32, %arg1: i32) -> (i32, i32, i32) {
    %c0_i32 = arith.constant 0 : i32
    %c0_i32_0 = arith.constant 0 : i32
    return %arg0, %arg1, %c0_i32 : i32, i32, i32
  }
  func.func @transform_1(%arg0: i32, %arg1: i32) -> (i32, i32) {
    %c0_i32 = arith.constant 0 : i32
    %c0_i32_0 = arith.constant 0 : i32
    return %arg1, %c0_i32 : i32, i32
  }
  func.func @transform_2(%arg0: i32, %arg1: i32) -> (i32, i32) {
    %c0_i32 = arith.constant 0 : i32
    %c0_i32_0 = arith.constant 0 : i32
    return %arg1, %c0_i32 : i32, i32
  }
  func.func @transform_3(%arg0: i32, %arg1: i32) -> (i32, i32) {
    %c0_i32 = arith.constant 0 : i32
    %c0_i32_0 = arith.constant 0 : i32
    %c0_i32_1 = arith.constant 0 : i32
    return %c0_i32, %c0_i32_0 : i32, i32
  }
  func.func @transform_4(%arg0: i32, %arg1: i32) -> (i32, i32) {
    %c0_i32 = arith.constant 0 : i32
    %c0_i32_0 = arith.constant 0 : i32
    %c0_i32_1 = arith.constant 0 : i32
    return %c0_i32, %c0_i32_0 : i32, i32
  }
  func.func @transform_5(%arg0: i32, %arg1: i32) -> (i32, i32) {
    %c0_i32 = arith.constant 0 : i32
    %c0_i32_0 = arith.constant 0 : i32
    %c0_i32_1 = arith.constant 0 : i32
    return %c0_i32, %c0_i32_0 : i32, i32
  }
  func.func @transform_6(%arg0: i32, %arg1: i32) -> (i32, i32) {
    %c0_i32 = arith.constant 0 : i32
    %c0_i32_0 = arith.constant 0 : i32
    %c0_i32_1 = arith.constant 0 : i32
    return %c0_i32, %c0_i32_0 : i32, i32
  }
  func.func @transform_7(%arg0: i32, %arg1: i32) -> (i32, i32) {
    %c0_i32 = arith.constant 0 : i32
    %c0_i32_0 = arith.constant 0 : i32
    %c0_i32_1 = arith.constant 0 : i32
    return %c0_i32, %c0_i32_0 : i32, i32
  }
  func.func @transform_8(%arg0: i32, %arg1: i32) -> (i32, i32) {
    %c0_i32 = arith.constant 0 : i32
    %c0_i32_0 = arith.constant 0 : i32
    %c0_i32_1 = arith.constant 0 : i32
    return %c0_i32, %c0_i32_0 : i32, i32
  }
  func.func @transform_9(%arg0: i32, %arg1: i32) -> (i32, i32) {
    %c0_i32 = arith.constant 0 : i32
    %c0_i32_0 = arith.constant 0 : i32
    %c0_i32_1 = arith.constant 0 : i32
    return %c0_i32, %c0_i32_0 : i32, i32
  }
  func.func @transform_10(%arg0: i32, %arg1: i32) -> (i32, i32) {
    %c0_i32 = arith.constant 0 : i32
    %c0_i32_0 = arith.constant 0 : i32
    %c0_i32_1 = arith.constant 0 : i32
    return %c0_i32, %c0_i32_0 : i32, i32
  }
  func.func @transform_11(%arg0: i32, %arg1: i32) -> (i32, i32) {
    %c0_i32 = arith.constant 0 : i32
    %c0_i32_0 = arith.constant 0 : i32
    %c0_i32_1 = arith.constant 0 : i32
    return %c0_i32, %c0_i32_0 : i32, i32
  }
  func.func @transform_12(%arg0: i32, %arg1: i32) -> (i32, i32) {
    %c0_i32 = arith.constant 0 : i32
    %c0_i32_0 = arith.constant 0 : i32
    %c0_i32_1 = arith.constant 0 : i32
    return %c0_i32, %c0_i32_0 : i32, i32
  }
  func.func @transform_13(%arg0: i32, %arg1: i32) -> (i32, i32) {
    %c0_i32 = arith.constant 0 : i32
    %c0_i32_0 = arith.constant 0 : i32
    %c0_i32_1 = arith.constant 0 : i32
    return %c0_i32, %c0_i32_0 : i32, i32
  }
  func.func @transform_14(%arg0: i32, %arg1: i32) -> (i32, i32, i32, i32) {
    %c0_i32 = arith.constant 0 : i32
    %c0_i32_0 = arith.constant 0 : i32
    %c0_i32_1 = arith.constant 0 : i32
    return %arg0, %c0_i32, %arg1, %c0_i32_0 : i32, i32, i32, i32
  }
  func.func @transform_15(%arg0: i32, %arg1: i32) -> (i32, i32, i32, i32) {
    %c0_i32 = arith.constant 0 : i32
    %c0_i32_0 = arith.constant 0 : i32
    %c0_i32_1 = arith.constant 0 : i32
    return %arg0, %c0_i32, %arg1, %c0_i32_0 : i32, i32, i32, i32
  }
  func.func @transform_16(%arg0: i32, %arg1: i32) -> (i32, i32, i32, i32) {
    %c0_i32 = arith.constant 0 : i32
    %c0_i32_0 = arith.constant 0 : i32
    %c0_i32_1 = arith.constant 0 : i32
    return %arg0, %c0_i32, %arg1, %c0_i32_0 : i32, i32, i32, i32
  }
  func.func @transform_17(%arg0: i32, %arg1: i32) -> (i32, i32, i32, i32) {
    %c0_i32 = arith.constant 0 : i32
    %c0_i32_0 = arith.constant 0 : i32
    %c0_i32_1 = arith.constant 0 : i32
    return %arg0, %c0_i32, %arg1, %c0_i32_0 : i32, i32, i32, i32
  }
  func.func @transform_18(%arg0: i32, %arg1: i32) -> (i32, i32, i32) {
    %c0_i32 = arith.constant 0 : i32
    %c0_i32_0 = arith.constant 0 : i32
    return %arg0, %arg1, %c0_i32 : i32, i32, i32
  }
}

</mosaic_0001>

<bundles_post_ra>
// kernel: tpu_custom_call.1
= control target key start
LH: loop header
LB: loop body
LE: loop exit
PB: predicated region body
PF: predicated region fallthrough
CT: control target
= control target key end

     0   :  { %s2643_s0 = inlined_call_operand.vmem [shape: f32[2,8,32], index: 0, kind: input, shape index: {}]   ;;  %s2644_s1 = inlined_call_operand.vmem [shape: f32[8,4], index: 1, kind: input, shape index: {}]   ;;  %s2645_s2 = inlined_call_operand.vmem [shape: f32[8,4], index: 2, kind: input, shape index: {}]   ;;  %s2646_s3 = inlined_call_operand.vmem [shape: f32[1,32], index: 3, kind: input, shape index: {}]   ;;  %s2647_s4 = inlined_call_operand.vmem [shape: f32[32,24], index: 4, kind: input, shape index: {}]   ;;  %s2648_s5 = inlined_call_operand.vmem [shape: f32[1,24], index: 5, kind: input, shape index: {}]   ;;  %s2649_s6 = inlined_call_operand.vmem [shape: f32[32,16], index: 6, kind: input, shape index: {}]   ;;  %s2650_s7 = inlined_call_operand.vmem [shape: f32[1,16], index: 7, kind: input, shape index: {}]   ;;  %s2651_s8 = inlined_call_operand.vmem [shape: f32[1,16], index: 8, kind: input, shape index: {}]   ;;  %s2652_s9 = inlined_call_operand.vmem [shape: f32[1,16], index: 9, kind: input, shape index: {}]   ;;  %s2653_s10 = inlined_call_operand.vmem [shape: f32[16,64], index: 10, kind: input, shape index: {}]   ;;  %s2654_s11 = inlined_call_operand.vmem [shape: f32[1,64], index: 11, kind: input, shape index: {}]   ;;  %s2655_s12 = inlined_call_operand.vmem [shape: f32[16,64], index: 12, kind: input, shape index: {}]   ;;  %s2656_s13 = inlined_call_operand.vmem [shape: f32[1,64], index: 13, kind: input, shape index: {}]   ;;  %s2657_s14 = inlined_call_operand.hbm [shape: f32[2,4,8,8], index: 14, kind: output, shape index: {0}]   ;;  %s2658_s15 = inlined_call_operand.hbm [shape: f32[2,4,8,8], index: 15, kind: output, shape index: {1}]   ;;  %s2659_s16 = inlined_call_operand.hbm [shape: f32[2,4,8,8], index: 16, kind: output, shape index: {2}]   ;;  %s2660_s17 = inlined_call_operand.hbm [shape: f32[2,4,8,8], index: 17, kind: output, shape index: {3}]   ;;  %s2661_s18 = inlined_call_operand.hbm [shape: f32[2,8,8], index: 18, kind: output, shape index: {4}]  }
   0x1   :  { %2683 = sst [smem:[#allocation17_spill]] %s2643_s0 }
   0x2   :  { %2684 = sst [smem:[#allocation18_spill]] %s2644_s1 }
   0x3   :  { %2685 = sst [smem:[#allocation19_spill]] %s2645_s2 }
   0x4   :  { %2686 = sst [smem:[#allocation20_spill]] %s2646_s3 }
   0x5   :  { %2687 = sst [smem:[#allocation21_spill]] %s2647_s4 }
   0x6   :  { %2688 = sst [smem:[#allocation22_spill]] %s2648_s5 }
   0x7   :  { %2689 = sst [smem:[#allocation23_spill]] %s2649_s6 }
   0x8   :  { %2690 = sst [smem:[#allocation24_spill]] %s2650_s7 }
   0x9   :  { %2691 = sst [smem:[#allocation25_spill]] %s2651_s8 }
   0xa   :  { %2692 = sst [smem:[#allocation26_spill]] %s2652_s9 }
   0xb   :  { %2693 = sst [smem:[#allocation27_spill]] %s2653_s10 }
   0xc   :  { %2694 = sst [smem:[#allocation28_spill]] %s2659_s16 }
   0xd   :  { %24 = vsyncpa [#allocation3], 0 }
   0xe   :  { %26 = vsyncpa [#allocation3 + $0x1], 0 }
   0xf   :  { %27 = vsyncpa [#allocation5], 0 }
  0x10   :  { %29 = vsyncpa [#allocation5 + $0x1], 0 }
  0x11   :  { %30 = vsyncpa [#allocation8], 0 }
  0x12   :  { %32 = vsyncpa [#allocation8 + $0x1], 0  ;;  %s2164_s27 = smov 0   ;;  %s2166_s28 = smov 0  }
  0x13   :  { %s2168_s29 = smov 0   ;;  %s2170_s30 = smov 0  }
  0x14   :  { %s2172_s0 = smov 0   ;;  %s2174_s19 = smov 0  }
  0x15 LB: > { %2695 = sst [smem:[#allocation13_spill]] %s2015_s27  ;;  %s2662_s1 = sadd.s32 4294967295, %s2035_s19   ;;  %s2035_s19 = sphi %s2174_s19, %s38_s19   ;;  %s2031_s0 = sphi %s2172_s0, %s2736_s0   ;;  %s2027_s30 = sphi %s2170_s30, %s2735_s30   ;;  %s2023_s29 = sphi %s2168_s29, %s2739_s29   ;;  %s2019_s28 = sphi %s2166_s28, %s2738_s28   ;;  %s2015_s27 = sphi %s2164_s27, %s2737_s27  }
  0x16   : > { %2696 = sst [smem:[#allocation14_spill]] %s2031_s0  ;;  %s2665_s20 = sadd.s32 4294967294, %s2035_s19  }
  0x17   : > { %s50_s21 = sadd.s32 1, %s2031_s0  ;;  %s370_s22 = sadd.s32 1, %s2023_s29 }
  0x18   : > { %p52_p0 = scmp.ge.s32.totalorder %s50_s21, 2  ;;  %p380_p1 = scmp.ne.s32.totalorder %s2023_s29, %s2019_s28 }
  0x19   : > { %p381_p2 = scmp.eq.s32.totalorder %s2662_s1, 1  ;;  %p386_p3 = scmp.ne.s32.totalorder %s2019_s28, %s2015_s27 }
  0x1a   : > { %s2741_s21 = smov (%p52_p0, %s50_s21), 0  ;;  %p387_p5 = scmp.eq.s32.totalorder %s2665_s20, 1 }
  0x1b   : > { %2697 = sst [smem:[#allocation15_spill]] %s2741_s21  ;;  %p2206_p4 = por %p381_p2, %p380_p1 }
  0x1c   : > { %s365_s23 = ssub.s32 %s2031_s0, %s2741_s21  ;;  %p1637_p6 = scmp.ge.s32.totalorder %s2035_s19, 1 }
  0x1d   : > { %p368_p7 = scmp.eq.s32.totalorder %s365_s23, 0  ;;  %p2215_p8 = por %p387_p5, %p386_p3 }
  0x1e   : > { %p574_p9 = scmp.lt.s32.totalorder %s2035_s19, 3 }
  0x1f   : > { %s2221_s25 = scalar_select %p368_p7, %s2023_s29, %s370_s22  }
  0x20   : > { %p575_p10 = pnand %p1637_p6, %p574_p9 }
  0x21   : > { %2700 = sst [smem:[#allocation16_spill]] %s2221_s25  ;;  %p658_p11 = scmp.lt.s32.totalorder (!%p575_p10), %s2027_s30, 1 }
  0x22   : > { %578 = sbr.rel (%p575_p10) target bundleno = 1479 (0x5c7), region = 76  ;;  %s2701_s20 = sld [smem:[#allocation17_spill]] (!%p575_p10) }
  0x23   : > { %s2702_s4 = sld [smem:[#allocation21_spill]] (!%p575_p10)  ;;  %s2039_s27 = smov (!%p575_p10), 36  }
  0x24   : > { %s2703_s3 = sld [smem:[#allocation20_spill]] (!%p575_p10)  ;;  %s2669_s0 = smov (!%p575_p10), 52  }
  0x25   : > { %s2704_s5 = sld [smem:[#allocation22_spill]] (!%p575_p10)  ;;  %s2675_s23 = smov (!%p575_p10), 20  }
  0x26   : > { %s2705_s16 = sld [smem:[#allocation18_spill]] (!%p575_p10)  ;;  %s2670_s25 = smov (!%p575_p10), 48  }
  0x27   : > { %s659_s26 = scalar_select %p658_p11, %s2027_s30, 1  ;;  %vm676_vm0 = vcmask 261120   ;;  %v2037_v4 = vmov 0.0   ;;  %vm2038_vm1 = vmmov 0   ;;  %vm778_vm2 = vcmask 130048   ;;  %v974_v46 = vld [vmem:[%s2655_s12 + $0x8] sm:$0xff] }
  0x28   : > { %1703 = vmatprep.subr.mxu0 %v2037_v4  ;;  %1711 = vmatprep.mubr.msk.f32.mxu0 %vm2038_vm1, %v2037_v4  ;;  %s2706_s10 = sld [smem:[#allocation27_spill]]  ;;  %v1648_v36 = vld [vmem:[%s2654_s11] ss:$0 sm:$0xff]  ;;  %vm1057_vm3 = vcmask 64512   ;;  %s2048_s22 = smov 44  }
  0x29   : > { %s1643_s1 = sshll.u32 %s659_s26, 3  ;;  %v695_v3 = vld [vmem:[%s2702_s4 + $0x18] sm:$0xff]  ;;  %v694_v5 = vld [vmem:[%s2702_s4 + $0x10] sm:$0xff]  ;;  %1714 = vmatprep.subr.mxu1 %v2037_v4  ;;  %v693_v6 = vld [vmem:[%s2702_s4 + $0x8] sm:$0xff]  ;;  %1718 = vmatprep.mubr.msk.f32.mxu1 %vm2038_vm1, %v2037_v4  ;;  %s2668_s26 = smov 60  }
  0x2a   : > { %s664_s21 = scalar_lea.vmem %s2701_s20, %s1643_s1  ;;  %1704 = vmatpush3.msra.mxu0 %v695_v3  ;;  %v692_v7 = vld [vmem:[%s2702_s4] sm:$0xff]  ;;  %s2707_s1 = sld [smem:[#allocation19_spill]] }
  0x2b   : > { %v673_v0 = vld [vmem:[%s664_s21] sm:$0xff]  ;;  %1705 = vmatprep.subr.mxu0 %v2037_v4  ;;  %s2674_s20 = smov 32   ;;  %s2673_s21 = smov 40  }
  0x2c   : > { %v675_v1 = vmul.f32 %v673_v0, %v673_v0  ;;  %1706 = vmatpush3.msra.mxu0 %v694_v5  ;;  %v1644_v12 = vld [vmem:[%s2703_s3] ss:$0 sm:$0xff]  ;;  %s2708_s8 = sld [smem:[#allocation25_spill]]  ;;  %s2712_s3 = smov 60  }
  0x2d   : > { %1707 = vmatprep.subr.mxu0 %v2037_v4  ;;  %v1645_v15 = vld [vmem:[%s2704_s5] ss:$0 sm:$0xff]  ;;  %s2709_s6 = sld [smem:[#allocation23_spill]]  ;;  %s2714_s4 = smov 32  }
  0x2e   : > { %v677_v2 = vsel %vm676_vm0, %v675_v1, 0.0  ;;  %1708 = vmatpush3.msra.mxu0 %v693_v6  ;;  %v2268_v21 = vld [vmem:[%s2705_s16] sm:$0xff]  ;;  %v795_v22 = vld [vmem:[%s2706_s10 + $0x8] sm:$0xff]  ;;  %s2710_s7 = sld [smem:[#allocation24_spill]]  ;;  %s2717_s16 = smov 56  }
  0x2f   : > { %678 = vadd.xlane.f32.xlu0 %v677_v2  ;;  %1709 = vmatprep.subr.mxu0 %v2037_v4  ;;  %v794_v23 = vld [vmem:[%s2706_s10] sm:$0xff]  ;;  %s2719_s9 = sld [smem:[#allocation26_spill]] }
  0x30   : > { %1710 = vmatpush3.msra.mxu0 %v692_v7  ;;  %1715 = vmatpush3.msra.mxu1 %v795_v22  ;;  %v1056_v24 = vld [vmem:[%s2707_s1] sm:$0xff] }
  0x31   : > { %1732 = vmatprep.subr.mxu0 %v2037_v4  ;;  %1716 = vmatprep.subr.mxu1 %v2037_v4  ;;  %v973_v47 = vld [vmem:[%s2655_s12] sm:$0xff] }
  0x32   : > { %1717 = vmatpush3.msra.mxu1 %v794_v23  ;;  %v1647_v29 = vld [vmem:[%s2708_s8] ss:$0 sm:$0xff] }
  0x33   : > { %1721 = vmatprep.subr.mxu1 %v2037_v4  ;;  %v879_v32 = vld [vmem:[%s2709_s6 + $0x18] sm:$0xff]  ;;  %v878_v33 = vld [vmem:[%s2709_s6 + $0x10] sm:$0xff]  ;;  %v877_v34 = vld [vmem:[%s2709_s6 + $0x8] sm:$0xff] }
  0x34   : > { %v876_v35 = vld [vmem:[%s2709_s6] sm:$0xff] }
  0x35   : > { %v1650_v40 = vld [vmem:[%s2710_s7] ss:$0 sm:$0xff]  ;;  %s2059_s7 = smov [#allocation7]  }
  0x36   : > { %v1652_v52 = vld [vmem:[%s2719_s9] ss:$0 sm:$0xff]  ;;  %s1851_s8 = sshll.u32 %s2059_s7, 4  ;;  %s1852_s8 = int_to_ptr.vmem [resolvable:$false] %s1851_s8 }
  0x37   : > { %v1653_v59 = vld [vmem:[%s2656_s13] ss:$0 sm:$0xff] }
  0xb8   : > { %v679_v8 = vpop.xlane.xlu0 %678 }
  0xb9   : > { %v681_v9 = vmul.f32 0.03125, %v679_v8 }
  0xbb   : > { %v682_v10 = vadd.f32 1.1920929e-07, %v681_v9 }
  0xbd   : > { %1841 = vrsqrt.f32 %v682_v10 }
  0xca   : > { %v1842_v11 = vpop.eup %1841 }
  0xcb   : > { %v684_v13 = vmul.f32 %v1842_v11, %v673_v0 }
  0xcd   : > { %v691_v14 = vmul.f32 %v1644_v12, %v684_v13 }
  0xcf   : > { %1712 = vmatmul.mubr.msk.f32.vlgmr.msra.gmra.mxu0 %vm676_vm0, %v691_v14 }
  0xd0   : > { %1736 = vmatprep.mubr.msk.f32.mxu0 %vm2038_vm1, %v2037_v4  ;;  %1733 = vmatpush3.msra.mxu0 %v974_v46 }
  0xd1   : > { %1734 = vmatprep.subr.mxu0 %v2037_v4 }
  0xd2   : > { %1735 = vmatpush3.msra.mxu0 %v973_v47 }
 0x18f   : > { %v772_v16 = vpop.f32.mrf.mxu0 }
 0x190   : > { %v2260_v17 = vadd.f32 %v1645_v15, %v772_v16 }
 0x191   : > { %v1713_v18 = vpop.f32.mrf.mxu0 }
 0x192   : > { %v777_v19 = vmul.f32 %v2260_v17, %v2260_v17 }
 0x194   : > { %v779_v20 = vsel %vm778_vm2, %v777_v19, 0.0 }
 0x195   : > { %780 = vadd.xlane.f32.xlu0 %v779_v20 }
 0x1ab   : > { %1084 = vrot.lane.b32.xlu0 %v2268_v21, %s2039_s27 }
 0x1af   : > { %1189 = vrot.lane.b32.xlu0 %v2268_v21, %s2669_s0  ;;  %s2671_s0 = smov 16  }
 0x1b3   : > { %1241 = vrot.lane.b32.xlu0 %v2268_v21, %s2668_s26  ;;  %s2672_s26 = smov 56  }
 0x1b7   : > { %1278 = vrot.lane.b32.xlu0 %v2268_v21, %s2675_s23  ;;  %s2055_s23 = smov 112  }
 0x1bb   : > { %1080 = vrot.lane.b32.xlu0 %v1056_v24, %s2674_s20  ;;  %s2716_s20 = smov 48  }
 0x1bf   : > { %1133 = vrot.lane.b32.xlu0 %v1056_v24, %s2673_s21  ;;  %s2711_s21 = smov 52  }
 0x1c3   : > { %1185 = vrot.lane.b32.xlu0 %v1056_v24, %s2670_s25 }
 0x1c7   : > { %1237 = vrot.lane.b32.xlu0 %v1056_v24, %s2672_s26 }
 0x1cb   : > { %1274 = vrot.lane.b32.xlu0 %v1056_v24, %s2671_s0  ;;  %s2318_s0 = sand.u32 1, %s2019_s28  }
 0x1cc   : > { %s2321_s26 = sshll.u32 %s2318_s0, 5 }
 0x1cd   : > { %s2329_s25 = scalar_lea.vmem [#allocation6], %s2321_s26  ;;  %s650_s1 = scalar_lea.vmem [#allocation7], %s2321_s26 }
 0x21e   : > { %v781_v25 = vpop.xlane.xlu0 %780 }
 0x21f   : > { %v783_v26 = vmul.f32 0.0625, %v781_v25 }
 0x221   : > { %v784_v27 = vadd.f32 1.1920929e-07, %v783_v26 }
 0x222   : > { %v1085_v57 = vpop.permute.xlu0 %1084 }
 0x223   : > { %1843 = vrsqrt.f32 %v784_v27 }
 0x226   : > { %v1190_v1 = vpop.permute.xlu0 %1189 }
 0x22a   : > { %v1242_v5 = vpop.permute.xlu0 %1241 }
 0x22e   : > { %v1279_v11 = vpop.permute.xlu0 %1278 }
 0x22f   : > { %v1281_v13 = vmul.f32 %v1279_v11, %v2260_v17 }
 0x230   : > { %v1844_v28 = vpop.eup %1843 }
 0x231   : > { %v786_v30 = vmul.f32 %v1844_v28, %v2260_v17 }
 0x232   : > { %v1081_v15 = vpop.permute.xlu0 %1080 }
 0x233   : > { %v793_v31 = vmul.f32 %v1647_v29, %v786_v30 }
 0x235   : > { %1719 = vmatmul.mubr.msk.f32.vlgmr.msra.gmra.mxu1 %vm778_vm2, %v793_v31 }
 0x236   : > { %1722 = vmatpush3.msra.mxu1 %v879_v32  ;;  %1729 = vmatprep.mubr.msk.f32.mxu1 %vm2038_vm1, %v2037_v4  ;;  %v1134_v18 = vpop.permute.xlu0 %1133 }
 0x237   : > { %1723 = vmatprep.subr.mxu1 %v2037_v4 }
 0x238   : > { %1724 = vmatpush3.msra.mxu1 %v878_v33 }
 0x239   : > { %1725 = vmatprep.subr.mxu1 %v2037_v4 }
 0x23a   : > { %1726 = vmatpush3.msra.mxu1 %v877_v34  ;;  %v1186_v20 = vpop.permute.xlu0 %1185 }
 0x23b   : > { %1727 = vmatprep.subr.mxu1 %v2037_v4 }
 0x23c   : > { %1728 = vmatpush3.msra.mxu1 %v876_v35 }
 0x23d   : > { %1730 = vmatmul.mubr.msk.f32.vlgmr.msra.gmra.mxu1 %vm676_vm0, %v691_v14 }
 0x23e   : > { %v2393_v22 = vpop.permute.xlu0 %1237 }
 0x2f5   : > { %v872_v37 = vpop.f32.mrf.mxu1 }
 0x2f6   : > { %v2326_v38 = vadd.f32 %v1648_v36, %v872_v37 }
 0x2f7   : > { %v1720_v39 = vpop.f32.mrf.mxu1 }
 0x2f8   : > { %1058 = vst.msk [vmem:[%s2329_s25] sm:$0xff] %vm1057_vm3, %v2326_v38 }
 0x2fd   : > { %v953_v41 = vpop.f32.mrf.mxu1 }
 0x2fe   : > { %v954_v42 = vadd.f32 %v1650_v40, %v953_v41 }
 0x2ff   : > { %v1731_v43 = vpop.f32.mrf.mxu1 }
 0x300   : > { %v958_v44 = vmul.f32 %v954_v42, %v954_v42 }
 0x302   : > { %v959_v45 = vsel %vm778_vm2, %v958_v44, 0.0 }
 0x303   : > { %960 = vadd.xlane.f32.xlu1 %v959_v45 }
 0x314   : > { %1071 = vrot.lane.b32.xlu1 %v1056_v24, %s2039_s27  ;;  %s2713_s27 = smov 20  }
 0x318   : > { %1124 = vrot.lane.b32.xlu1 %v1056_v24, %s2048_s22 }
 0x31c   : > { %1137 = vrot.lane.b32.xlu1 %v2268_v21, %s2048_s22  ;;  %s2715_s22 = smov 40  }
 0x320   : > { %1176 = vrot.lane.b32.xlu1 %v1056_v24, %s2711_s21  ;;  %s2718_s21 = smov 16  }
 0x324   : > { %1228 = vrot.lane.b32.xlu1 %v1056_v24, %s2712_s3  ;;  %s2677_s3 = smov 80  }
 0x328   : > { %1265 = vrot.lane.b32.xlu1 %v1056_v24, %s2713_s27  ;;  %s2372_s27 = scalar_lea.vmem [#allocation2], %s2321_s26  ;;  %v1275_v24 = vpop.permute.xlu0 %1274 }
 0x329   : > { %v1277_v34 = vmul.f32 %v1275_v24, %v2260_v17 }
 0x32c   : > { %1066 = vrot.lane.b32.xlu1 %v2268_v21, %s2714_s4  ;;  %s2054_s4 = smov 116  }
 0x330   : > { %1120 = vrot.lane.b32.xlu1 %v2268_v21, %s2715_s22  ;;  %s2049_s22 = smov 124  }
 0x334   : > { %1172 = vrot.lane.b32.xlu1 %v2268_v21, %s2716_s20  ;;  %s2678_s20 = smov 88  }
 0x338   : > { %1224 = vrot.lane.b32.xlu1 %v2268_v21, %s2717_s16  ;;  %s2051_s16 = smov 96  }
 0x33c   : > { %1261 = vrot.lane.b32.xlu1 %v2268_v21, %s2718_s21  ;;  %s2676_s21 = smov 72  }
 0x38c   : > { %v961_v48 = vpop.xlane.xlu1 %960 }
 0x38d   : > { %v962_v49 = vmul.f32 0.0625, %v961_v48 }
 0x38f   : > { %v963_v50 = vadd.f32 1.1920929e-07, %v962_v49 }
 0x390   : > { %v1072_v55 = vpop.permute.xlu1 %1071 }
 0x391   : > { %1845 = vrsqrt.f32 %v963_v50 }
 0x394   : > { %v1125_v56 = vpop.permute.xlu1 %1124 }
 0x398   : > { %v1138_v58 = vpop.permute.xlu1 %1137 }
 0x39c   : > { %v1177_v2 = vpop.permute.xlu1 %1176 }
 0x39e   : > { %v1846_v51 = vpop.eup %1845 }
 0x39f   : > { %v965_v53 = vmul.f32 %v1846_v51, %v954_v42 }
 0x3a0   : > { %v1229_v6 = vpop.permute.xlu1 %1228 }
 0x3a1   : > { %v972_v54 = vmul.f32 %v1652_v52, %v965_v53 }
 0x3a3   : > { %1737 = vmatmul.mubr.msk.f32.vlgmr.msra.gmra.mxu0 %vm778_vm2, %v972_v54 }
 0x3a4   : > { %v1266_v12 = vpop.permute.xlu1 %1265 }
 0x3a5   : > { %v1268_v14 = vmul.f32 %v1266_v12, %v2260_v17 }
 0x3a8   : > { %v1067_v16 = vpop.permute.xlu1 %1066 }
 0x3ac   : > { %v1121_v19 = vpop.permute.xlu1 %1120 }
 0x3b0   : > { %v1173_v21 = vpop.permute.xlu1 %1172 }
 0x3b4   : > { %v2395_v23 = vpop.permute.xlu1 %1224 }
 0x3b8   : > { %v1262_v25 = vpop.permute.xlu1 %1261 }
 0x3b9   : > { %v1264_v35 = vmul.f32 %v1262_v25, %v2260_v17 }
 0x463   : > { %v1051_v60 = vpop.f32.mrf.mxu0 }
 0x464   : > { %v2367_v61 = vadd.f32 %v1653_v59, %v1051_v60 }
 0x465   : > { %v1738_v62 = vpop.f32.mrf.mxu0 }
 0x466   : > { %v1087_v63 = vmul.f32 %v1085_v57, %v2367_v61  ;;  %v1074_v0 = vmul.f32 %v1072_v55, %v2367_v61  ;;  %1064 = vst.msk [vmem:[%s2372_s27] sm:$0xff] %vm1057_vm3, %v2367_v61  ;;  %v1140_v3 = vmul.f32 %v1138_v58, %v2367_v61  ;;  %v1127_v4 = vmul.f32 %v1125_v56, %v2367_v61 }
 0x467   : > { %v1192_v7 = vmul.f32 %v1190_v1, %v2367_v61  ;;  %v1179_v8 = vmul.f32 %v1177_v2, %v2367_v61  ;;  %v1244_v9 = vmul.f32 %v1242_v5, %v2367_v61  ;;  %v1231_v10 = vmul.f32 %v1229_v6, %v2367_v61 }
 0x468   : > { %1089 = vrot.lane.b32.xlu0 %v1087_v63, %s2049_s22  ;;  %1076 = vrot.lane.b32.xlu1 %v1074_v0, %s2049_s22  ;;  %v1083_v44 = vmul.f32 %v1081_v15, %v2367_v61  ;;  %v1069_v45 = vmul.f32 %v1067_v16, %v2367_v61  ;;  %v1136_v48 = vmul.f32 %v1134_v18, %v2367_v61 }
 0x469   : > { %v1123_v49 = vmul.f32 %v1121_v19, %v2367_v61  ;;  %v1188_v52 = vmul.f32 %v1186_v20, %v2367_v61  ;;  %v1175_v53 = vmul.f32 %v1173_v21, %v2367_v61 }
 0x46c   : > { %1142 = vrot.lane.b32.xlu0 %v1140_v3, %s2049_s22  ;;  %1129 = vrot.lane.b32.xlu1 %v1127_v4, %s2049_s22 }
 0x470   : > { %1194 = vrot.lane.b32.xlu0 %v1192_v7, %s2049_s22  ;;  %1181 = vrot.lane.b32.xlu1 %v1179_v8, %s2049_s22 }
 0x474   : > { %1246 = vrot.lane.b32.xlu0 %v1244_v9, %s2049_s22  ;;  %1233 = vrot.lane.b32.xlu1 %v1231_v10, %s2049_s22 }
 0x478   : > { %1283 = vrot.lane.b32.xlu0 %v1281_v13, %s2049_s22  ;;  %1270 = vrot.lane.b32.xlu1 %v1268_v14, %s2049_s22  ;;  %s2056_s22 = smov 120  }
 0x47c   : > { %1109 = vrot.lane.b32.xlu0 %v2326_v38, %s2678_s20  ;;  %1060 = vrot.lane.b32.xlu1 %v2326_v38, %s2051_s16  ;;  %s2424_s20 = sshll.u32 %s2027_s30, 9 }
 0x480   : > { %1214 = vrot.lane.b32.xlu0 %v2326_v38, %s2676_s21  ;;  %1162 = vrot.lane.b32.xlu1 %v2326_v38, %s2677_s3  ;;  %s2720_s21 = sadd.s32 4294967295, %s2035_s19  }
 0x481   : > { %s2421_s3 = sand.u32 1, %s2720_s21  }
 0x4da   : > { %v1090_v26 = vpop.permute.xlu0 %1089  ;;  %v1077_v27 = vpop.permute.xlu1 %1076 }
 0x4db   : > { %v1092_v46 = vadd.f32 %v1090_v26, %v1083_v44  ;;  %v1079_v47 = vsub.f32 %v1069_v45, %v1077_v27 }
 0x4de   : > { %v1143_v28 = vpop.permute.xlu0 %1142  ;;  %v1130_v29 = vpop.permute.xlu1 %1129 }
 0x4df   : > { %v1145_v50 = vadd.f32 %v1143_v28, %v1136_v48  ;;  %v1132_v51 = vsub.f32 %v1123_v49, %v1130_v29 }
 0x4e2   : > { %v1195_v30 = vpop.permute.xlu0 %1194  ;;  %v2397_v31 = vpop.permute.xlu1 %1181 }
 0x4e3   : > { %v1197_v54 = vadd.f32 %v1195_v30, %v1188_v52  ;;  %v1184_v55 = vsub.f32 %v1175_v53, %v2397_v31 }
 0x4e6   : > { %v2399_v32 = vpop.permute.xlu0 %1246  ;;  %v2401_v33 = vpop.permute.xlu1 %1233 }
 0x4ea   : > { %v1284_v36 = vpop.permute.xlu0 %1283  ;;  %v1271_v37 = vpop.permute.xlu1 %1270 }
 0x4eb   : > { %v1286_v39 = vadd.f32 %v1284_v36, %v1277_v34  ;;  %v1273_v40 = vsub.f32 %v1264_v35, %v1271_v37 }
 0x4ed   : > { %1292 = vrot.lane.b32.xlu0 %v1286_v39, %s2054_s4  ;;  %1288 = vrot.lane.b32.xlu1 %v1273_v40, %s2055_s23  ;;  %s2057_s4 = smov 100  }
 0x4ee   : > { %v1110_v41 = vpop.permute.xlu0 %1109  ;;  %v1061_v42 = vpop.permute.xlu1 %1060 }
 0x4ef   : > { %1656 = vst.msk [vmem:[%s650_s1 + $0x8] sm:$0xff] %vm1057_vm3, %v1110_v41  ;;  %1063 = vst.msk [vmem:[%s650_s1] sm:$0xff] %vm1057_vm3, %v1061_v42 }
 0x4f1   : > { %1115 = vrot.lane.b32.xlu0 %v2367_v61, %s2056_s22  ;;  %1104 = vrot.lane.b32.xlu1 %v2326_v38, %s2056_s22  ;;  %s1383_s22 = sshll.u32 %s650_s1, 4  ;;  %s2428_s22 = int_to_ptr.vmem [resolvable:$true] %s1383_s22 }
 0x4f2   : > { %v1215_v17 = vpop.permute.xlu0 %1214  ;;  %v1163_v43 = vpop.permute.xlu1 %1162  ;;  %s1847_s6 = scalar_lea.vmem %s2428_s22, 512  ;;  %p1854_p1 = scmp.lt.s32.totalorder %s2428_s22, %s1852_s8 }
 0x4f3   : > { %1664 = vst.msk [vmem:[%s650_s1 + $0x18] sm:$0xff] %vm1057_vm3, %v1215_v17  ;;  %1660 = vst.msk [vmem:[%s650_s1 + $0x10] sm:$0xff] %vm1057_vm3, %v1163_v43  ;;  %p1848_p12 = scmp.ne.s32.totalorder %s2428_s22, %s1847_s6 }
 0x4f5   : > { %1167 = vrot.lane.b32.xlu0 %v2367_v61, %s2055_s23  ;;  %1157 = vrot.lane.b32.xlu1 %v2326_v38, %s2055_s23  ;;  %s2721_s23 = smov 88   ;;  %p1849_p13 = pnand %p1848_p12, %p2206_p4 }
 0x4f7   : > { %p1850_p0 = pneg %p1849_p13 }
 0x4f9   : > { %1098 = vrot.lane.b32.xlu0 %v1092_v46, %s2057_s4  ;;  %1094 = vrot.lane.b32.xlu1 %v1079_v47, %s2051_s16  ;;  %s2058_s16 = smov 92   ;;  %s2436_s4 = scalar_lea.hbm %s2660_s17, %s2424_s20 }
 0x4fd   : > { %1151 = vrot.lane.b32.xlu0 %v1145_v50, %s2058_s16  ;;  %1147 = vrot.lane.b32.xlu1 %v1132_v51, %s2721_s23  ;;  %s1853_s16 = scalar_lea.vmem %s1852_s8, 1024 }
 0x4fe   : > { %p1855_p2 = scmp.lt.s32.totalorder %s1853_s16, %s1847_s6 }
 0x500   : > { %p1856_p3 = por %p1855_p2, %p1854_p1 }
 0x502   : > { %p1857_p5 = pnand %p1856_p3, %p1850_p0 }
 0x504   : > { %1860 = shalt.err (!%p1857_p5)
}
 0x505   : > { %s1861_s23 = scalar_lea.hbm %s2436_s4, 512  ;;  %s1865_s7 = scalar_lea.hbm %s2660_s17, 1024 }
 0x506   : > { %p1862_p6 = scmp.ne.s32.totalorder %s2436_s4, %s1861_s23  ;;  %p1866_p10 = scmp.lt.s32.totalorder %s2436_s4, %s2660_s17 }
 0x507   : > { %p1867_p11 = scmp.lt.s32.totalorder %s1865_s7, %s1861_s23 }
 0x508   : > { %p1863_p7 = pnand %p1862_p6, %p2206_p4 }
 0x509   : > { %p1868_p12 = por %p1867_p11, %p1866_p10 }
 0x50a   : > { %p1864_p9 = pneg %p1863_p7 }
 0x50c   : > { %p1869_p13 = pnand %p1868_p12, %p1864_p9 }
 0x50e   : > { %1872 = shalt.err (!%p1869_p13)
}
 0x50f   : > { %s2679_s6 = smov 128   ;;  %s2681_s8 = smov 8   ;;  %v1240_v56 = vmul.f32 %v2393_v22, %v2367_v61  ;;  %v1227_v57 = vmul.f32 %v2395_v23, %v2367_v61  ;;  %vm1101_vm4 = vcmask 31744  }
 0x510   : > { %s2722_s16 = scalar_lea.sflag [#allocation8], %s2421_s3  ;;  %s2062_s5 = smov 84  }
 0x511   : > { %1742 = dma.vmem_to_hbm [thread:$0]  (%p2206_p4), %s2428_s22, 512, %s2436_s4, %s2722_s16, %s2679_s6, %s2679_s6, %s2681_s8   ;;  %v1249_v58 = vadd.f32 %v2399_v32, %v1240_v56  ;;  %v1236_v59 = vsub.f32 %v1227_v57, %v2401_v33 }
 0x512   : > { %1203 = vrot.lane.b32.xlu0 %v1197_v54, %s2062_s5  ;;  %s2723_s9 = smov 80   ;;  %s2063_s23 = smov 76  }
 0x513   : > { %1199 = vrot.lane.b32.xlu1 %v1184_v55, %s2723_s9  ;;  %s2724_s21 = smov 72   ;;  %s2064_s1 = smov 104  }
 0x514   : > { %s1642_s22 = sshll.u32 %s2318_s0, 3  ;;  %s1680_s4 = sshll.u32 %s2027_s30, 7 }
 0x515   : > { %s657_s7 = scalar_lea.vmem [#allocation9], %s1642_s22  ;;  %s1398_s6 = scalar_lea.hbm %s2661_s18, %s1680_s4 }
 0x516   : > { %1255 = vrot.lane.b32.xlu0 %v1249_v58, %s2063_s23  ;;  %s1400_s16 = sshll.u32 %s657_s7, 4  ;;  %s2065_s30 = smov [#allocation9]   ;;  %s1401_s16 = int_to_ptr.vmem [resolvable:$true] %s1400_s16 }
 0x517   : > { %1251 = vrot.lane.b32.xlu1 %v1236_v59, %s2724_s21  ;;  %s1873_s23 = scalar_lea.vmem %s1401_s16, 128  ;;  %s1877_s21 = sshll.u32 %s2065_s30, 4  ;;  %s1878_s21 = int_to_ptr.vmem [resolvable:$false] %s1877_s21 }
 0x518   : > { %p1874_p0 = scmp.ne.s32.totalorder %s1401_s16, %s1873_s23  ;;  %p1880_p3 = scmp.lt.s32.totalorder %s1401_s16, %s1878_s21 }
 0x51a   : > { %1219 = vrot.lane.b32.xlu0 %v2367_v61, %s2064_s1  ;;  %p1875_p1 = pnand %p1874_p0, %p2206_p4 }
 0x51b   : > { %1209 = vrot.lane.b32.xlu1 %v2326_v38, %s2064_s1  ;;  %s1879_s1 = scalar_lea.vmem %s1878_s21, 256 }
 0x51c   : > { %p1876_p2 = pneg %p1875_p1  ;;  %p1881_p5 = scmp.lt.s32.totalorder %s1879_s1, %s1873_s23 }
 0x51e   : > { %p1882_p6 = por %p1881_p5, %p1880_p3 }
 0x520   : > { %p1883_p7 = pnand %p1882_p6, %p1876_p2 }
 0x55f   : > { %v1293_v60 = vpop.permute.xlu0 %1292  ;;  %v1289_v62 = vpop.permute.xlu1 %1288 }
 0x560   : > { %v1295_v63 = vsel %vm1101_vm4, %v1289_v62, %v1293_v60 }
 0x561   : > { %1296 = vst.msk [vmem:[%s657_s7] sm:$0xff] %vm1057_vm3, %v1295_v63 }
 0x562   : > { %1886 = shalt.err (!%p1883_p7)
}
 0x563   : > { %s1887_s22 = scalar_lea.hbm %s1398_s6, 128  ;;  %s1891_s5 = scalar_lea.hbm %s2661_s18, 256 }
 0x564   : > { %p1888_p9 = scmp.ne.s32.totalorder %s1398_s6, %s1887_s22  ;;  %p1892_p12 = scmp.lt.s32.totalorder %s1398_s6, %s2661_s18 }
 0x565   : > { %p1893_p13 = scmp.lt.s32.totalorder %s1891_s5, %s1887_s22 }
 0x566   : > { %p1889_p10 = pnand %p1888_p9, %p2206_p4 }
 0x567   : > { %p1894_p0 = por %p1893_p13, %p1892_p12 }
 0x568   : > { %p1890_p11 = pneg %p1889_p10 }
 0x56a   : > { %p1895_p1 = pnand %p1894_p0, %p1890_p11 }
 0x56c   : > { %1898 = shalt.err (!%p1895_p1)
}
 0x56d   : > { %s2725_s23 = scalar_lea.sflag [#allocation8], %s2421_s3  ;;  %v1116_v38 = vpop.permute.xlu0 %1115  ;;  %v1105_v61 = vpop.permute.xlu1 %1104  ;;  %s636_s8 = scalar_lea.vmem [#allocation4], %s2321_s26 }
 0x56e   : > { %1743 = dma.vmem_to_hbm [thread:$0]  (%p2206_p4), %s1401_s16, 128, %s1398_s6, %s2725_s23   ;;  %1657 = vst.msk [vmem:[%s2372_s27 + $0x8] sm:$0xff] %vm1057_vm3, %v1116_v38  ;;  %1655 = vst.msk [vmem:[%s2329_s25 + $0x8] sm:$0xff] %vm1057_vm3, %v1105_v61 }
 0x56f   : > { %s1349_s6 = sshll.u32 %s636_s8, 4  ;;  %s1332_s26 = sshll.u32 %s2372_s27, 4  ;;  %s2511_s6 = int_to_ptr.vmem [resolvable:$true] %s1349_s6  ;;  %s2521_s26 = int_to_ptr.vmem [resolvable:$true] %s1332_s26 }
 0x570   : > { %s2517_s21 = scalar_lea.hbm %s2658_s15, %s2424_s20  ;;  %s2528_s7 = scalar_lea.hbm %s2657_s14, %s2424_s20 }
 0x571   : > { %v1168_v0 = vpop.permute.xlu0 %1167  ;;  %v1158_v1 = vpop.permute.xlu1 %1157  ;;  %s1899_s9 = scalar_lea.vmem %s2511_s6, 512  ;;  %s2066_s23 = smov [#allocation4]  }
 0x572   : > { %1661 = vst.msk [vmem:[%s2372_s27 + $0x10] sm:$0xff] %vm1057_vm3, %v1168_v0  ;;  %1659 = vst.msk [vmem:[%s2329_s25 + $0x10] sm:$0xff] %vm1057_vm3, %v1158_v1  ;;  %p1900_p2 = scmp.ne.s32.totalorder %s2511_s6, %s1899_s9  ;;  %s1903_s16 = sshll.u32 %s2066_s23, 4  ;;  %s1904_s16 = int_to_ptr.vmem [resolvable:$false] %s1903_s16 }
 0x573   : > { %s1905_s30 = scalar_lea.vmem %s1904_s16, 1024  ;;  %p1906_p6 = scmp.lt.s32.totalorder %s2511_s6, %s1904_s16 }
 0x574   : > { %p1901_p3 = pnand %p1900_p2, %p2206_p4  ;;  %p1907_p7 = scmp.lt.s32.totalorder %s1905_s30, %s1899_s9 }
 0x575   : > { %v1099_v2 = vpop.permute.xlu0 %1098  ;;  %v1095_v3 = vpop.permute.xlu1 %1094 }
 0x576   : > { %v1102_v4 = vsel %vm1101_vm4, %v1095_v3, %v1099_v2  ;;  %p1902_p5 = pneg %p1901_p3  ;;  %p1908_p9 = por %p1907_p7, %p1906_p6 }
 0x577   : > { %1103 = vst.msk [vmem:[%s636_s8] sm:$0xff] %vm1057_vm3, %v1102_v4 }
 0x578   : > { %p1909_p10 = pnand %p1908_p9, %p1902_p5 }
 0x579   : > { %v1152_v5 = vpop.permute.xlu0 %1151  ;;  %v1148_v6 = vpop.permute.xlu1 %1147 }
 0x57a   : > { %v1154_v7 = vsel %vm1101_vm4, %v1148_v6, %v1152_v5 }
 0x57b   : > { %1658 = vst.msk [vmem:[%s636_s8 + $0x8] sm:$0xff] %vm1057_vm3, %v1154_v7 }
 0x584   : > { %v1204_v8 = vpop.permute.xlu0 %1203 }
 0x585   : > { %v1200_v9 = vpop.permute.xlu1 %1199 }
 0x586   : > { %v1206_v10 = vsel %vm1101_vm4, %v1200_v9, %v1204_v8 }
 0x587   : > { %1662 = vst.msk [vmem:[%s636_s8 + $0x10] sm:$0xff] %vm1057_vm3, %v1206_v10 }
 0x588   : > { %v1256_v11 = vpop.permute.xlu0 %1255 }
 0x589   : > { %v1252_v12 = vpop.permute.xlu1 %1251 }
 0x58a   : > { %v1258_v13 = vsel %vm1101_vm4, %v1252_v12, %v1256_v11 }
 0x58b   : > { %1666 = vst.msk [vmem:[%s636_s8 + $0x18] sm:$0xff] %vm1057_vm3, %v1258_v13 }
 0x58c   : > { %1912 = shalt.err (!%p1909_p10)
}
 0x58d   : > { %s1913_s8 = scalar_lea.hbm %s2517_s21, 512  ;;  %s1917_s23 = scalar_lea.hbm %s2658_s15, 1024 }
 0x58e   : > { %p1914_p11 = scmp.ne.s32.totalorder %s2517_s21, %s1913_s8  ;;  %p1918_p0 = scmp.lt.s32.totalorder %s2517_s21, %s2658_s15 }
 0x58f   : > { %p1919_p1 = scmp.lt.s32.totalorder %s1917_s23, %s1913_s8 }
 0x590   : > { %p1915_p12 = pnand %p1914_p11, %p2206_p4 }
 0x591   : > { %p1920_p2 = por %p1919_p1, %p1918_p0 }
 0x592   : > { %p1916_p13 = pneg %p1915_p12 }
 0x594   : > { %p1921_p3 = pnand %p1920_p2, %p1916_p13 }
 0x596   : > { %1924 = shalt.err (!%p1921_p3)
}
 0x597   : > { %s2726_s9 = smov 8   ;;  %s2727_s16 = smov 128   ;;  %v1220_v14 = vpop.permute.xlu0 %1219  ;;  %v1210_v15 = vpop.permute.xlu1 %1209 }
 0x598   : > { %s2728_s30 = scalar_lea.sflag [#allocation5], %s2421_s3  ;;  %s2729_s1 = sshll.u32 %s2329_s25, 4  ;;  %1665 = vst.msk [vmem:[%s2372_s27 + $0x18] sm:$0xff] %vm1057_vm3, %v1220_v14  ;;  %1663 = vst.msk [vmem:[%s2329_s25 + $0x18] sm:$0xff] %vm1057_vm3, %v1210_v15  ;;  %s2558_s1 = int_to_ptr.vmem [resolvable:$true] %s2729_s1 }
 0x599   : > { %1740 = dma.vmem_to_hbm [thread:$0]  (%p2206_p4), %s2511_s6, 512, %s2517_s21, %s2728_s30, %s2727_s16, %s2727_s16, %s2726_s9  }
 0x59a   : > { %s2730_s22 = sld [smem:[#allocation28_spill]]  ;;  %s1298_s23 = scalar_lea.sflag [#allocation3], %s2318_s0 }
 0x59b   : > { %s1925_s10 = scalar_lea.vmem %s2521_s26, 512  ;;  %s2067_s6 = smov [#allocation2]  }
 0x59c   : > { %p1926_p5 = scmp.ne.s32.totalorder %s2521_s26, %s1925_s10  ;;  %s1929_s21 = sshll.u32 %s2067_s6, 4  ;;  %s1930_s21 = int_to_ptr.vmem [resolvable:$false] %s1929_s21 }
 0x59d   : > { %s1931_s30 = scalar_lea.vmem %s1930_s21, 1024  ;;  %p1932_p9 = scmp.lt.s32.totalorder %s2521_s26, %s1930_s21 }
 0x59e   : > { %p1927_p6 = pnand %p1926_p5, %p2206_p4  ;;  %p1933_p10 = scmp.lt.s32.totalorder %s1931_s30, %s1925_s10 }
 0x5a0   : > { %s2564_s4 = scalar_lea.hbm %s2730_s22, %s2424_s20  ;;  %p1928_p7 = pneg %p1927_p6 }
 0x5a1   : > { %p1934_p11 = por %p1933_p10, %p1932_p9 }
 0x5a3   : > { %p1935_p12 = pnand %p1934_p11, %p1928_p7 }
 0x5a5   : > { %1938 = shalt.err (!%p1935_p12)
}
 0x5a6   : > { %s1939_s25 = scalar_lea.hbm %s2528_s7, 512  ;;  %s1943_s20 = scalar_lea.hbm %s2657_s14, 1024 }
 0x5a7   : > { %p1940_p13 = scmp.ne.s32.totalorder %s2528_s7, %s1939_s25  ;;  %p1944_p2 = scmp.lt.s32.totalorder %s2528_s7, %s2657_s14 }
 0x5a8   : > { %p1945_p3 = scmp.lt.s32.totalorder %s1943_s20, %s1939_s25 }
 0x5a9   : > { %p1941_p0 = pnand %p1940_p13, %p2206_p4 }
 0x5aa   : > { %p1946_p5 = por %p1945_p3, %p1944_p2 }
 0x5ab   : > { %p1942_p1 = pneg %p1941_p0 }
 0x5ad   : > { %p1947_p6 = pnand %p1946_p5, %p1942_p1 }
 0x5af   : > { %1950 = shalt.err (!%p1947_p6)
}
 0x5b0   : > { %1739 = dma.vmem_to_hbm [thread:$0]  (%p2206_p4), %s2521_s26, 512, %s2528_s7, %s1298_s23, %s2727_s16, %s2727_s16, %s2726_s9  }
 0x5b1   : > { %s1951_s10 = scalar_lea.vmem %s2558_s1, 512  ;;  %s2068_s6 = smov [#allocation6]  }
 0x5b2   : > { %p1952_p7 = scmp.ne.s32.totalorder %s2558_s1, %s1951_s10  ;;  %s1955_s21 = sshll.u32 %s2068_s6, 4  ;;  %s1956_s21 = int_to_ptr.vmem [resolvable:$false] %s1955_s21 }
 0x5b3   : > { %s1957_s30 = scalar_lea.vmem %s1956_s21, 1024  ;;  %p1958_p11 = scmp.lt.s32.totalorder %s2558_s1, %s1956_s21 }
 0x5b4   : > { %p1953_p9 = pnand %p1952_p7, %p2206_p4  ;;  %p1959_p12 = scmp.lt.s32.totalorder %s1957_s30, %s1951_s10 }
 0x5b6   : > { %p1954_p10 = pneg %p1953_p9  ;;  %p1960_p13 = por %p1959_p12, %p1958_p11 }
 0x5b8   : > { %p1961_p0 = pnand %p1960_p13, %p1954_p10 }
 0x5ba   : > { %1964 = shalt.err (!%p1961_p0)
}
 0x5bb   : > { %s1965_s25 = scalar_lea.hbm %s2564_s4, 512  ;;  %s1969_s23 = scalar_lea.hbm %s2730_s22, 1024 }
 0x5bc   : > { %p1966_p1 = scmp.ne.s32.totalorder %s2564_s4, %s1965_s25  ;;  %p1970_p5 = scmp.lt.s32.totalorder %s2564_s4, %s2730_s22 }
 0x5bd   : > { %p1971_p6 = scmp.lt.s32.totalorder %s1969_s23, %s1965_s25 }
 0x5be   : > { %p1967_p2 = pnand %p1966_p1, %p2206_p4 }
 0x5bf   : > { %p1972_p7 = por %p1971_p6, %p1970_p5 }
 0x5c0   : > { %p1968_p3 = pneg %p1967_p2 }
 0x5c2   : > { %p1973_p9 = pnand %p1972_p7, %p1968_p3 }
 0x5c4   : > { %1976 = shalt.err (!%p1973_p9)
}
 0x5c5   : > { %s2731_s20 = scalar_lea.sflag [#allocation5], %s2421_s3 }
 0x5c6   : > { %1741 = dma.vmem_to_hbm [thread:$0]  (%p2206_p4), %s2558_s1, 512, %s2564_s4, %s2731_s20, %s2727_s16, %s2727_s16, %s2726_s9  }
 0x5c7 PF: > { %s2732_s5 = sld [smem:[#allocation13_spill]]  ;;  %p1765_p10 = scmp.ge.s32.totalorder %s2035_s19, 2 }
 0x5c9   : > { %p1750_p11 = pnand %p1765_p10, %p2215_p8 }
 0x5cb   : > { %p1751_p12 = pneg %p1750_p11 }
 0x5cd   : > { %s1412_s8 = sand.u32 1, %s2732_s5  }
 0x5ce   : > { %s1413_s10 = scalar_lea.sflag [#allocation3], %s1412_s8 }
 0x5cf   : > { %2002 = dma.done.wait (%p1751_p12), %s1413_s10, 512  }
 0x5d0   : > { %2004 = vsyncadd (%p1751_p12), %s1413_s10, 4294966784  ;;  %s2733_s2 = sadd.s32 4294967294, %s2035_s19  }
 0x5d1   : > { %s1421_s6 = sand.u32 1, %s2733_s2  }
 0x5d2   : > { %s1422_s21 = scalar_lea.sflag [#allocation5], %s1421_s6 }
 0x5d3   : > { %2006 = dma.done.wait (%p1751_p12), %s1422_s21, 1024  }
 0x5d4   : > { %2008 = vsyncadd (%p1751_p12), %s1422_s21, 4294966272  ;;  %s1440_s3 = scalar_lea.sflag [#allocation8], %s1421_s6 }
 0x5d5   : > { %2010 = dma.done.wait (%p1751_p12), %s1440_s3, 640  }
 0x5d6   : > { %2012 = vsyncadd (%p1751_p12), %s1440_s3, 4294966656  ;;  %s38_s19 = sadd.s32 1, %s2035_s19   ;;  %s2734_s24 = sld [smem:[#allocation16_spill]] }
 0x5d7   : > { %p35_p4 = scmp.ge.s32.totalorder %s38_s19, 4   ;;  %s2735_s30 = sld [smem:[#allocation14_spill]] }
 0x5d8   : > { %s2736_s0 = sld [smem:[#allocation15_spill]]  ;;  %s2737_s27 = smov %s2019_s28 }
 0x5d9   : > { %s2738_s28 = smov %s2023_s29  ;;  %37 = sbr.rel (!%p35_p4) target bundleno = 21 (0x15), region = 193 }
 0x5dc   : > { %s2739_s29 = smov %s2734_s24 }
 0x5de   :  { %1454 = vsyncpa [#allocation3], 1 }
 0x5df   :  { %1456 = vsyncpa [#allocation3 + $0x1], 1 }
 0x5e0   :  { %1457 = vsyncpa [#allocation5], 1 }
 0x5e1   :  { %1459 = vsyncpa [#allocation5 + $0x1], 1 }
 0x5e2   :  { %1460 = vsyncpa [#allocation8], 1 }
 0x5e3   :  { %1462 = vsyncpa [#allocation8 + $0x1], 1 }

</bundles_post_ra>
